<compile_context>
chip_gen: v7x
topology: tpu7x:2x2x1
jax: 0.10.0
libtpu: 0.0.40
codegen_flags: <defaults>
</compile_context>

<pallas_src>
import functools
import math

import jax
import jax.numpy as jnp
from jax.experimental import pallas as pl
from jax.experimental.pallas import tpu as pltpu

CFG = dict(vocab=100, max_pos=16, type_vocab=2, hidden=32, heads=4,
           intermediate=64, layers=2, num_labels=3)

LANE = 128          # hidden / vocab / qkv / ffn / labels all padded to 128 lanes
NEG_INF = -1e9
LN_EPS = 1e-12


# ------------------------------ fused kernel --------------------------------

def _fused_forward_kernel(
        # per-call inputs
        tok_ref,       # [bs, 2] int32 : (token id, batch id)
        keymeta_ref,   # [2, bs] int32 : (attention mask, batch id)
        hsrc_ref,      # [B, 1]  f32
        pos_ref,       # [S, LANE] f32 : pos + token_type embeddings
        # packed parameters
        gmats_ref,     # [3, LANE, LANE] bf16 : word_emb, pooler W, classifier W
        gvecs_ref,     # [8, LANE] f32 : emb_ln_g, emb_ln_b, bp, wc_src, bc, pad
        lmats_ref,     # [3*L, LANE, LANE] bf16 : per layer qkv_w, wi, wo2
        lvecs_ref,     # [L, 8, LANE] f32 : qkv_b, bo, ln1_g/b, bi, bo2, ln2_g/b
        lwo_ref,       # [L, H, LANE] bf16 : attention output projection
        # output
        out_ref,       # [B, LANE] f32
        *, batch, seq, layers, heads, d_head, h_real, scale):
    bs = batch * seq
    f32 = jnp.float32
    bf16 = jnp.bfloat16

    def mm(a, b):
        # bf16 MXU operands, f32 accumulation (3x fewer MXU passes than f32xf32)
        return jnp.dot(a.astype(bf16), b.astype(bf16), preferred_element_type=f32)

    def layer_norm(x, g, b):
        # Padded lanes of x are zero, so a plain lane-sum divided by the real
        # hidden size is exact; g/b are zero-padded so padded lanes stay zero.
        mu = jnp.sum(x, axis=-1, keepdims=True) * (1.0 / h_real)
        var = jnp.sum(x * x, axis=-1, keepdims=True) * (1.0 / h_real) - mu * mu
        return (x - mu) * jax.lax.rsqrt(var + LN_EPS) * g + b

    gvecs = gvecs_ref[...]
    emb_g, emb_b = gvecs[0:1], gvecs[1:2]
    bp, wc_src, bc = gvecs[2:3], gvecs[3:4], gvecs[4:5]

    tok = tok_ref[...]                                   # [bs, 2]
    ids, bid_col = tok[:, 0:1], tok[:, 1:2]              # [bs, 1] each
    keymeta = keymeta_ref[...]                           # [2, bs]
    key_ok = keymeta[0:1] > 0                            # [1, bs]
    bid_row = keymeta[1:2]                               # [1, bs]

    # --- embeddings: gather via one-hot matmul + pos/type add + LayerNorm ---
    iota_v = jax.lax.broadcasted_iota(jnp.int32, (bs, LANE), 1)
    one_hot = (iota_v == ids).astype(f32)                # [bs, LANE]
    x = mm(one_hot, gmats_ref[0])                        # [bs, LANE]
    x = (x.reshape(batch, seq, LANE) + pos_ref[...][None]).reshape(bs, LANE)
    x = layer_norm(x, emb_g, emb_b)

    # additive attention bias (batch block-diagonal + key padding), built on
    # the VPU from tiny int metadata; shared by all layers / heads
    bias = jnp.where((bid_col == bid_row) & key_ok, 0.0, NEG_INF).astype(f32)

    # --- transformer layers (static unroll; everything stays in VMEM) -------
    for l in range(layers):
        lvec = lvecs_ref[l]                              # [8, LANE] f32
        qkv_b, bo = lvec[0:1], lvec[1:2]
        ln1_g, ln1_b = lvec[2:3], lvec[3:4]
        bi, bo2 = lvec[4:5], lvec[5:6]
        ln2_g, ln2_b = lvec[6:7], lvec[7:8]

        resid = x
        # fused QKV projection, output padded to a full 128-lane slab
        qkv = (mm(x, lmats_ref[3 * l]) + qkv_b).astype(bf16)      # [bs, LANE]
        # stack heads once -> two batched dot_generals (no per-head MXU loop)
        q3 = jnp.stack([qkv[:, h * d_head:(h + 1) * d_head]
                        for h in range(heads)], axis=0)            # [nH, bs, dH]
        k3 = jnp.stack([qkv[:, h_real + h * d_head:h_real + (h + 1) * d_head]
                        for h in range(heads)], axis=0)
        v3 = jnp.stack([qkv[:, 2 * h_real + h * d_head:2 * h_real + (h + 1) * d_head]
                        for h in range(heads)], axis=0)
        s = jax.lax.dot_general(q3, k3, (((2,), (2,)), ((0,), (0,))),
                                preferred_element_type=f32)        # [nH, bs, bs]
        s = s * scale + bias[None]
        s = s - jnp.max(s, axis=-1, keepdims=True)
        p = jnp.exp(s)
        p = p * pl.reciprocal(jnp.sum(p, axis=-1, keepdims=True), approx=True)
        ctx = jax.lax.dot_general(p.astype(bf16), v3, (((2,), (1,)), ((0,), (0,))),
                                  preferred_element_type=f32)      # [nH, bs, dH]
        # fuse the per-head output projections: lane-concat + ONE matmul
        ctx = jnp.concatenate([ctx[h] for h in range(heads)], axis=-1)  # [bs, H]
        attn = mm(ctx, lwo_ref[l]) + bo                             # [bs, LANE]
        x = layer_norm(attn + resid, ln1_g, ln1_b)

        ff = mm(x, lmats_ref[3 * l + 1]) + bi                       # [bs, LANE]
        # TODO(synk): HF BertModel uses exact (erf) GELU; tanh approx kept here.
        ff = jax.nn.gelu(ff)
        ff = mm(ff, lmats_ref[3 * l + 2]) + bo2                     # [bs, LANE]
        x = layer_norm(ff + x, ln2_g, ln2_b)

    # --- pooler on CLS rows + classifier (rank-1 has_source term) -----------
    col = jax.lax.broadcasted_iota(jnp.int32, (batch, bs), 1)
    row = jax.lax.broadcasted_iota(jnp.int32, (batch, bs), 0)
    sel = (col == row * seq).astype(f32)                            # [B, bs]
    cls = mm(sel, x)                                                # [B, LANE]
    pooled = jnp.tanh(mm(cls, gmats_ref[1]) + bp)
    # nn.Dropout(0.3) is identity at inference (model.eval()).
    # TODO(synk): training-mode dropout (p=0.3) not implemented.
    logits = mm(pooled, gmats_ref[2]) + hsrc_ref[...] * wc_src + bc  # [B, LANE]
    out_ref[...] = logits


# ------------------------- params (init / pack) -----------------------------

def init_params(key, cfg):
    """Synthetic BERT-style weights at their real (unpadded) sizes."""
    H, I, L = cfg["hidden"], cfg["intermediate"], cfg["layers"]

    def nrm(k, shape, scale=0.02):
        return scale * jax.random.normal(k, shape, jnp.float32)

    keys = iter(jax.random.split(key, 64))
    p = {
        "word_emb": nrm(next(keys), (cfg["vocab"], H)),
        "pos_emb": nrm(next(keys), (cfg["max_pos"], H)),
        "type_emb": nrm(next(keys), (cfg["type_vocab"], H)),
        "emb_ln_g": jnp.ones((1, H), jnp.float32),
        "emb_ln_b": jnp.zeros((1, H), jnp.float32),
        "layers": [],
        "wp": nrm(next(keys), (H, H)), "bp": jnp.zeros((1, H), jnp.float32),
        # classifier: in = hidden + 1 (has_source), out = num_labels
        "w_cls": nrm(next(keys), (H + 1, cfg["num_labels"])),
        "b_cls": jnp.zeros((1, cfg["num_labels"]), jnp.float32),
    }
    for _ in range(L):
        p["layers"].append({
            "wq": nrm(next(keys), (H, H)), "bq": jnp.zeros((1, H), jnp.float32),
            "wk": nrm(next(keys), (H, H)), "bk": jnp.zeros((1, H), jnp.float32),
            "wv": nrm(next(keys), (H, H)), "bv": jnp.zeros((1, H), jnp.float32),
            "wo": nrm(next(keys), (H, H)), "bo": jnp.zeros((1, H), jnp.float32),
            "ln1_g": jnp.ones((1, H), jnp.float32),
            "ln1_b": jnp.zeros((1, H), jnp.float32),
            "wi": nrm(next(keys), (H, I)), "bi": jnp.zeros((1, I), jnp.float32),
            "wo2": nrm(next(keys), (I, H)), "bo2": jnp.zeros((1, H), jnp.float32),
            "ln2_g": jnp.ones((1, H), jnp.float32),
            "ln2_b": jnp.zeros((1, H), jnp.float32),
        })
    return p


def _pad2(a, rows, cols, dtype=jnp.float32):
    out = jnp.zeros((rows, cols), dtype)
    return out.at[:a.shape[0], :a.shape[1]].set(a.astype(dtype))


def pack_params(p, cfg):
    """Zero-pad to lane-dense 128-wide layouts, fuse QKV, bf16 matmul weights,
    and consolidate everything into a handful of stacked operands."""
    H, L = cfg["hidden"], cfg["layers"]
    bf16 = jnp.bfloat16

    glob_mats = jnp.stack([
        _pad2(p["word_emb"], LANE, LANE, bf16),            # 0: word embeddings
        _pad2(p["wp"], LANE, LANE, bf16),                  # 1: pooler dense
        _pad2(p["w_cls"][:H], LANE, LANE, bf16),           # 2: classifier (hidden part)
    ])
    gvecs = jnp.concatenate(
        [_pad2(v, 1, LANE) for v in
         (p["emb_ln_g"], p["emb_ln_b"], p["bp"], p["w_cls"][H:H + 1], p["b_cls"])]
        + [jnp.zeros((3, LANE), jnp.float32)], axis=0)     # [8, LANE] f32

    # token_type_ids == 0 folded into the position table
    pos_type = _pad2(p["pos_emb"] + p["type_emb"][0][None, :], cfg["max_pos"], LANE)

    lmats, lvecs, lwo = [], [], []
    for lyr in p["layers"]:
        qkv_w = jnp.concatenate([lyr["wq"], lyr["wk"], lyr["wv"]], axis=1)   # [H, 3H]
        qkv_b = jnp.concatenate([lyr["bq"], lyr["bk"], lyr["bv"]], axis=1)   # [1, 3H]
        lmats.extend([_pad2(qkv_w, LANE, LANE, bf16),      # 3H=96 -> 128 lanes
                      _pad2(lyr["wi"], LANE, LANE, bf16),  # I=64  -> 128 lanes
                      _pad2(lyr["wo2"], LANE, LANE, bf16)])
        lvecs.append(jnp.concatenate(
            [_pad2(v, 1, LANE) for v in
             (qkv_b, lyr["bo"], lyr["ln1_g"], lyr["ln1_b"],
              lyr["bi"], lyr["bo2"], lyr["ln2_g"], lyr["ln2_b"])], axis=0))  # [8, LANE]
        lwo.append(_pad2(lyr["wo"], H, LANE, bf16))
    return {"glob_mats": glob_mats, "gvecs": gvecs, "pos_type": pos_type,
            "lmats": jnp.stack(lmats),                     # [3L, LANE, LANE] bf16
            "lvecs": jnp.stack(lvecs),                     # [L, 8, LANE] f32
            "lwo": jnp.stack(lwo)}                         # [L, H, LANE] bf16


# ------------------------------ forward wrapper -----------------------------

def sentiment_forward(packed, input_ids, attention_mask, has_source, cfg=CFG):
    B, S = input_ids.shape
    bs = B * S
    H, nH = cfg["hidden"], cfg["heads"]
    dH = H // nH

    # Only tiny integer metadata is built here; the [bs,bs] additive bias and
    # the position broadcast are constructed in-kernel on the VPU.
    bid = jnp.arange(bs, dtype=jnp.int32) // S             # constant, folded by jit
    tok = jnp.stack([input_ids.astype(jnp.int32).reshape(bs), bid], axis=1)       # [bs, 2]
    keymeta = jnp.stack([attention_mask.astype(jnp.int32).reshape(bs), bid], axis=0)  # [2, bs]
    hsrc = has_source.astype(jnp.float32).reshape(B, 1)
    pos = packed["pos_type"][:S]                           # [S, LANE]

    kernel = functools.partial(
        _fused_forward_kernel, batch=B, seq=S, layers=cfg["layers"],
        heads=nH, d_head=dH, h_real=H, scale=1.0 / math.sqrt(dH))

    operands = (tok, keymeta, hsrc, pos,
                packed["glob_mats"], packed["gvecs"],
                packed["lmats"], packed["lvecs"], packed["lwo"])

    # Single fused call; all weights/activations (~350 KB) live wholly in VMEM.
    # TODO(synk): at real BERT scale, switch to a grid: a layer axis marked
    # "arbitrary" with weight BlockSpecs (index_map l -> l, pipeline_mode
    # pl.Buffered(2-3)) so bf16 weights stream from HBM, a "parallel" row-tile
    # axis so v7x's two TensorCores split the batch, vmem_limit_bytes budgeted
    # against v7x's 64 MiB VMEM (vs 128 MiB on v5e/v6e), and 256-wide tiles on
    # v6e/v7x (keep 128 on v5e's 128x128 MXUs).
    out = pl.pallas_call(
        kernel,
        out_shape=jax.ShapeDtypeStruct((B, LANE), jnp.float32),
        in_specs=[pl.BlockSpec(memory_space=pltpu.MemorySpace.VMEM)] * len(operands),
        out_specs=pl.BlockSpec(memory_space=pltpu.MemorySpace.VMEM),
    )(*operands)
    return out[:, :cfg["num_labels"]]


# -------------------------- pure-JAX reference ------------------------------

def reference_forward(params, input_ids, attention_mask, has_source, cfg=CFG):
    B, S = input_ids.shape
    H, nH = cfg["hidden"], cfg["heads"]
    dH = H // nH

    def ln(x, g, b):
        mu = jnp.mean(x, -1, keepdims=True)
        var = jnp.mean((x - mu) ** 2, -1, keepdims=True)
        return (x - mu) * jax.lax.rsqrt(var + LN_EPS) * g + b

    x = (params["word_emb"][input_ids] + params["pos_emb"][None, :S, :]
         + params["type_emb"][0][None, None, :])
    x = ln(x.reshape(B * S, H), params["emb_ln_g"], params["emb_ln_b"])

    maskh = jnp.repeat(attention_mask.astype(jnp.float32), nH, axis=0)

    def split(t):
        return t.reshape(B, S, nH, dH).transpose(0, 2, 1, 3).reshape(B * nH, S, dH)

    def merge(t):
        return t.reshape(B, nH, S, dH).transpose(0, 2, 1, 3).reshape(B * S, H)

    for lyr in params["layers"]:
        h = x
        q = split(h @ lyr["wq"] + lyr["bq"])
        k = split(h @ lyr["wk"] + lyr["bk"])
        v = split(h @ lyr["wv"] + lyr["bv"])
        s = jnp.einsum("bqd,bkd->bqk", q, k) / math.sqrt(dH)
        s = s + (maskh[:, None, :] - 1.0) * 1e9
        p = jax.nn.softmax(s, axis=-1)
        ctx = merge(jnp.einsum("bqk,bkd->bqd", p, v))
        attn = ctx @ lyr["wo"] + lyr["bo"]
        x = ln(attn + h, lyr["ln1_g"], lyr["ln1_b"])
        ff = jax.nn.gelu(x @ lyr["wi"] + lyr["bi"])
        ff = ff @ lyr["wo2"] + lyr["bo2"]
        x = ln(ff + x, lyr["ln2_g"], lyr["ln2_b"])

    cls = x.reshape(B, S, H)[:, 0, :]
    pooled = jnp.tanh(cls @ params["wp"] + params["bp"])
    combined = jnp.concatenate(
        [pooled, has_source.astype(jnp.float32)[:, None]], axis=1)
    return combined @ params["w_cls"] + params["b_cls"]


# ----------------------------------- main ------------------------------------

if __name__ == "__main__":
    key = jax.random.PRNGKey(0)
    k_param, k_ids, k_src = jax.random.split(key, 3)

    B, S = 2, 8
    params = init_params(k_param, CFG)
    packed = pack_params(params, CFG)

    input_ids = jax.random.randint(k_ids, (B, S), 0, CFG["vocab"], jnp.int32)
    attention_mask = jnp.array([[1, 1, 1, 1, 1, 1, 1, 1],
                                [1, 1, 1, 1, 1, 0, 0, 0]], jnp.int32)
    has_source = jnp.array([1.0, 0.0], jnp.float32)

    fwd = jax.jit(sentiment_forward)
    logits = fwd(packed, input_ids, attention_mask, has_source)
    jax.block_until_ready(logits)
    assert logits.shape == (B, CFG["num_labels"])

    # numerical sanity check against a pure-JAX f32 reference of the same math
    # (kernel uses bf16 MXU operands with f32 accumulation)
    with jax.default_matmul_precision("highest"):
        ref = reference_forward(params, input_ids, attention_mask, has_source)
    assert bool(jnp.allclose(logits, ref, atol=5e-3, rtol=5e-2)), (
        f"max abs diff {float(jnp.max(jnp.abs(logits - ref))):.2e}")

    print("KERNEL_OK")
</pallas_src>

<mosaic_0001>
module attributes {stable_mosaic.version = 11 : i64} {
  func.func @_fused_forward_kernel(%arg0: memref<16x2xi32, #tpu.memory_space<vmem>>, %arg1: memref<2x16xi32, #tpu.memory_space<vmem>>, %arg2: memref<2x1xf32, #tpu.memory_space<vmem>>, %arg3: memref<8x128xf32, #tpu.memory_space<vmem>>, %arg4: memref<3x128x128xbf16, #tpu.memory_space<vmem>>, %arg5: memref<8x128xf32, #tpu.memory_space<vmem>>, %arg6: memref<6x128x128xbf16, #tpu.memory_space<vmem>>, %arg7: memref<2x8x128xf32, #tpu.memory_space<vmem>>, %arg8: memref<2x32x128xbf16, #tpu.memory_space<vmem>>, %arg9: memref<2x128xf32, #tpu.memory_space<vmem>>) attributes {dimension_semantics = [], scalar_prefetch = 0 : i64, scratch_operands = 0 : i64, tpu.core_type = #tpu.core_type<tc>} {
    %c0 = arith.constant 0 : index
    %c0_0 = arith.constant 0 : index
    %0 = vector.load %arg5[%c0, %c0_0] : memref<8x128xf32, #tpu.memory_space<vmem>>, vector<8x128xf32>
    %1 = vector.extract_strided_slice %0 {offsets = [0, 0], sizes = [1, 128], strides = [1, 1]} : vector<8x128xf32> to vector<1x128xf32>
    %2 = vector.extract_strided_slice %0 {offsets = [1, 0], sizes = [1, 128], strides = [1, 1]} : vector<8x128xf32> to vector<1x128xf32>
    %3 = vector.extract_strided_slice %0 {offsets = [2, 0], sizes = [1, 128], strides = [1, 1]} : vector<8x128xf32> to vector<1x128xf32>
    %4 = vector.extract_strided_slice %0 {offsets = [3, 0], sizes = [1, 128], strides = [1, 1]} : vector<8x128xf32> to vector<1x128xf32>
    %5 = vector.extract_strided_slice %0 {offsets = [4, 0], sizes = [1, 128], strides = [1, 1]} : vector<8x128xf32> to vector<1x128xf32>
    %c0_1 = arith.constant 0 : index
    %c0_2 = arith.constant 0 : index
    %6 = vector.load %arg0[%c0_1, %c0_2] : memref<16x2xi32, #tpu.memory_space<vmem>>, vector<16x2xi32>
    %7 = vector.extract_strided_slice %6 {offsets = [0, 0], sizes = [16, 1], strides = [1, 1]} : vector<16x2xi32> to vector<16x1xi32>
    %8 = vector.extract_strided_slice %6 {offsets = [0, 1], sizes = [16, 1], strides = [1, 1]} : vector<16x2xi32> to vector<16x1xi32>
    %c0_3 = arith.constant 0 : index
    %c0_4 = arith.constant 0 : index
    %9 = vector.load %arg1[%c0_3, %c0_4] : memref<2x16xi32, #tpu.memory_space<vmem>>, vector<2x16xi32>
    %10 = vector.extract_strided_slice %9 {offsets = [0, 0], sizes = [1, 16], strides = [1, 1]} : vector<2x16xi32> to vector<1x16xi32>
    %c0_i32 = arith.constant 0 : i32
    %11 = vector.broadcast %c0_i32 : i32 to vector<1x16xi32>
    %12 = arith.cmpi sgt, %10, %11 : vector<1x16xi32>
    %13 = vector.extract_strided_slice %9 {offsets = [1, 0], sizes = [1, 16], strides = [1, 1]} : vector<2x16xi32> to vector<1x16xi32>
    %14 = tpu.iota {dimensions = array<i32: 1>} : vector<16x128xi32>
    %15 = vector.broadcast %7 : vector<16x1xi32> to vector<16x128xi32>
    %16 = arith.cmpi eq, %14, %15 : vector<16x128xi32>
    %17 = arith.extui %16 : vector<16x128xi1> to vector<16x128xi32>
    %18 = arith.sitofp %17 : vector<16x128xi32> to vector<16x128xf32>
    %c0_5 = arith.constant 0 : index
    %c0_6 = arith.constant 0 : index
    %c0_7 = arith.constant 0 : index
    %19 = vector.load %arg4[%c0_5, %c0_6, %c0_7] : memref<3x128x128xbf16, #tpu.memory_space<vmem>>, vector<1x128x128xbf16>
    %20 = vector.shape_cast %19 : vector<1x128x128xbf16> to vector<128x128xbf16>
    %21 = arith.truncf %18 : vector<16x128xf32> to vector<16x128xbf16>
    %cst = arith.constant dense<0.000000e+00> : vector<16x128xf32>
    %22 = tpu.matmul %21, %20, %cst {dimension_numbers = #tpu.dot_dimension_numbers<[1], [0], [0], [1], [0, 0, 1, 1], [], []>} : vector<16x128xbf16>, vector<128x128xbf16>, vector<16x128xf32> -> vector<16x128xf32>
    %23 = vector.shape_cast %22 : vector<16x128xf32> to vector<2x8x128xf32>
    %c0_8 = arith.constant 0 : index
    %c0_9 = arith.constant 0 : index
    %24 = vector.load %arg3[%c0_8, %c0_9] : memref<8x128xf32, #tpu.memory_space<vmem>>, vector<8x128xf32>
    %25 = vector.shape_cast %24 : vector<8x128xf32> to vector<1x8x128xf32>
    %26 = vector.broadcast %25 : vector<1x8x128xf32> to vector<2x8x128xf32>
    %27 = arith.addf %23, %26 : vector<2x8x128xf32>
    %28 = vector.shape_cast %27 : vector<2x8x128xf32> to vector<16x128xf32>
    %cst_10 = arith.constant dense<0.000000e+00> : vector<16xf32>
    %29 = vector.multi_reduction <add>, %28, %cst_10 [1] : vector<16x128xf32> to vector<16xf32>
    %30 = vector.shape_cast %29 : vector<16xf32> to vector<16x1xf32>
    %cst_11 = arith.constant 3.125000e-02 : f32
    %31 = vector.broadcast %cst_11 : f32 to vector<16x1xf32>
    %32 = arith.mulf %30, %31 : vector<16x1xf32>
    %33 = arith.mulf %28, %28 : vector<16x128xf32>
    %cst_12 = arith.constant dense<0.000000e+00> : vector<16xf32>
    %34 = vector.multi_reduction <add>, %33, %cst_12 [1] : vector<16x128xf32> to vector<16xf32>
    %35 = vector.shape_cast %34 : vector<16xf32> to vector<16x1xf32>
    %cst_13 = arith.constant 3.125000e-02 : f32
    %36 = vector.broadcast %cst_13 : f32 to vector<16x1xf32>
    %37 = arith.mulf %35, %36 : vector<16x1xf32>
    %38 = arith.mulf %32, %32 : vector<16x1xf32>
    %39 = arith.subf %37, %38 : vector<16x1xf32>
    %40 = vector.broadcast %32 : vector<16x1xf32> to vector<16x128xf32>
    %41 = arith.subf %28, %40 : vector<16x128xf32>
    %cst_14 = arith.constant 9.99999996E-13 : f32
    %42 = vector.broadcast %cst_14 : f32 to vector<16x1xf32>
    %43 = arith.addf %39, %42 : vector<16x1xf32>
    %44 = math.rsqrt %43 : vector<16x1xf32>
    %45 = vector.broadcast %44 : vector<16x1xf32> to vector<16x128xf32>
    %46 = arith.mulf %41, %45 : vector<16x128xf32>
    %47 = vector.broadcast %1 : vector<1x128xf32> to vector<16x128xf32>
    %48 = arith.mulf %46, %47 : vector<16x128xf32>
    %49 = vector.broadcast %2 : vector<1x128xf32> to vector<16x128xf32>
    %50 = arith.addf %48, %49 : vector<16x128xf32>
    %51 = vector.broadcast %8 : vector<16x1xi32> to vector<16x16xi32>
    %52 = vector.broadcast %13 : vector<1x16xi32> to vector<16x16xi32>
    %53 = arith.cmpi eq, %51, %52 : vector<16x16xi32>
    %54 = vector.broadcast %12 : vector<1x16xi1> to vector<16x16xi1>
    %55 = arith.andi %53, %54 : vector<16x16xi1>
    %cst_15 = arith.constant 0.000000e+00 : f32
    %cst_16 = arith.constant -1.000000e+09 : f32
    %56 = vector.broadcast %cst_15 : f32 to vector<16x16xf32>
    %57 = vector.broadcast %cst_16 : f32 to vector<16x16xf32>
    %58 = arith.select %55, %56, %57 : vector<16x16xi1>, vector<16x16xf32>
    %c0_17 = arith.constant 0 : index
    %c0_18 = arith.constant 0 : index
    %c0_19 = arith.constant 0 : index
    %59 = vector.load %arg7[%c0_17, %c0_18, %c0_19] : memref<2x8x128xf32, #tpu.memory_space<vmem>>, vector<1x8x128xf32>
    %60 = vector.shape_cast %59 : vector<1x8x128xf32> to vector<8x128xf32>
    %61 = vector.extract_strided_slice %60 {offsets = [0, 0], sizes = [1, 128], strides = [1, 1]} : vector<8x128xf32> to vector<1x128xf32>
    %62 = vector.extract_strided_slice %60 {offsets = [1, 0], sizes = [1, 128], strides = [1, 1]} : vector<8x128xf32> to vector<1x128xf32>
    %63 = vector.extract_strided_slice %60 {offsets = [2, 0], sizes = [1, 128], strides = [1, 1]} : vector<8x128xf32> to vector<1x128xf32>
    %64 = vector.extract_strided_slice %60 {offsets = [3, 0], sizes = [1, 128], strides = [1, 1]} : vector<8x128xf32> to vector<1x128xf32>
    %65 = vector.extract_strided_slice %60 {offsets = [4, 0], sizes = [1, 128], strides = [1, 1]} : vector<8x128xf32> to vector<1x128xf32>
    %66 = vector.extract_strided_slice %60 {offsets = [5, 0], sizes = [1, 128], strides = [1, 1]} : vector<8x128xf32> to vector<1x128xf32>
    %67 = vector.extract_strided_slice %60 {offsets = [6, 0], sizes = [1, 128], strides = [1, 1]} : vector<8x128xf32> to vector<1x128xf32>
    %68 = vector.extract_strided_slice %60 {offsets = [7, 0], sizes = [1, 128], strides = [1, 1]} : vector<8x128xf32> to vector<1x128xf32>
    %c0_20 = arith.constant 0 : index
    %c0_21 = arith.constant 0 : index
    %c0_22 = arith.constant 0 : index
    %69 = vector.load %arg6[%c0_20, %c0_21, %c0_22] : memref<6x128x128xbf16, #tpu.memory_space<vmem>>, vector<1x128x128xbf16>
    %70 = vector.shape_cast %69 : vector<1x128x128xbf16> to vector<128x128xbf16>
    %71 = arith.truncf %50 : vector<16x128xf32> to vector<16x128xbf16>
    %cst_23 = arith.constant dense<0.000000e+00> : vector<16x128xf32>
    %72 = tpu.matmul %71, %70, %cst_23 {dimension_numbers = #tpu.dot_dimension_numbers<[1], [0], [0], [1], [0, 0, 1, 1], [], []>} : vector<16x128xbf16>, vector<128x128xbf16>, vector<16x128xf32> -> vector<16x128xf32>
    %73 = vector.broadcast %61 : vector<1x128xf32> to vector<16x128xf32>
    %74 = arith.addf %72, %73 : vector<16x128xf32>
    %75 = arith.truncf %74 : vector<16x128xf32> to vector<16x128xbf16>
    %76 = vector.extract_strided_slice %75 {offsets = [0, 0], sizes = [16, 8], strides = [1, 1]} : vector<16x128xbf16> to vector<16x8xbf16>
    %77 = vector.extract_strided_slice %75 {offsets = [0, 8], sizes = [16, 8], strides = [1, 1]} : vector<16x128xbf16> to vector<16x8xbf16>
    %78 = vector.extract_strided_slice %75 {offsets = [0, 16], sizes = [16, 8], strides = [1, 1]} : vector<16x128xbf16> to vector<16x8xbf16>
    %79 = vector.extract_strided_slice %75 {offsets = [0, 24], sizes = [16, 8], strides = [1, 1]} : vector<16x128xbf16> to vector<16x8xbf16>
    %80 = vector.shape_cast %76 : vector<16x8xbf16> to vector<1x16x8xbf16>
    %81 = vector.shape_cast %77 : vector<16x8xbf16> to vector<1x16x8xbf16>
    %82 = vector.shape_cast %78 : vector<16x8xbf16> to vector<1x16x8xbf16>
    %83 = vector.shape_cast %79 : vector<16x8xbf16> to vector<1x16x8xbf16>
    %84 = tpu.concatenate %80, %81, %82, %83 in 0 : vector<1x16x8xbf16>, vector<1x16x8xbf16>, vector<1x16x8xbf16>, vector<1x16x8xbf16> -> vector<4x16x8xbf16>
    %85 = vector.extract_strided_slice %75 {offsets = [0, 32], sizes = [16, 8], strides = [1, 1]} : vector<16x128xbf16> to vector<16x8xbf16>
    %86 = vector.extract_strided_slice %75 {offsets = [0, 40], sizes = [16, 8], strides = [1, 1]} : vector<16x128xbf16> to vector<16x8xbf16>
    %87 = vector.extract_strided_slice %75 {offsets = [0, 48], sizes = [16, 8], strides = [1, 1]} : vector<16x128xbf16> to vector<16x8xbf16>
    %88 = vector.extract_strided_slice %75 {offsets = [0, 56], sizes = [16, 8], strides = [1, 1]} : vector<16x128xbf16> to vector<16x8xbf16>
    %89 = vector.shape_cast %85 : vector<16x8xbf16> to vector<1x16x8xbf16>
    %90 = vector.shape_cast %86 : vector<16x8xbf16> to vector<1x16x8xbf16>
    %91 = vector.shape_cast %87 : vector<16x8xbf16> to vector<1x16x8xbf16>
    %92 = vector.shape_cast %88 : vector<16x8xbf16> to vector<1x16x8xbf16>
    %93 = tpu.concatenate %89, %90, %91, %92 in 0 : vector<1x16x8xbf16>, vector<1x16x8xbf16>, vector<1x16x8xbf16>, vector<1x16x8xbf16> -> vector<4x16x8xbf16>
    %94 = vector.extract_strided_slice %75 {offsets = [0, 64], sizes = [16, 8], strides = [1, 1]} : vector<16x128xbf16> to vector<16x8xbf16>
    %95 = vector.extract_strided_slice %75 {offsets = [0, 72], sizes = [16, 8], strides = [1, 1]} : vector<16x128xbf16> to vector<16x8xbf16>
    %96 = vector.extract_strided_slice %75 {offsets = [0, 80], sizes = [16, 8], strides = [1, 1]} : vector<16x128xbf16> to vector<16x8xbf16>
    %97 = vector.extract_strided_slice %75 {offsets = [0, 88], sizes = [16, 8], strides = [1, 1]} : vector<16x128xbf16> to vector<16x8xbf16>
    %98 = vector.shape_cast %94 : vector<16x8xbf16> to vector<1x16x8xbf16>
    %99 = vector.shape_cast %95 : vector<16x8xbf16> to vector<1x16x8xbf16>
    %100 = vector.shape_cast %96 : vector<16x8xbf16> to vector<1x16x8xbf16>
    %101 = vector.shape_cast %97 : vector<16x8xbf16> to vector<1x16x8xbf16>
    %102 = tpu.concatenate %98, %99, %100, %101 in 0 : vector<1x16x8xbf16>, vector<1x16x8xbf16>, vector<1x16x8xbf16>, vector<1x16x8xbf16> -> vector<4x16x8xbf16>
    %cst_24 = arith.constant dense<0.000000e+00> : vector<4x16x16xf32>
    %103 = tpu.matmul %84, %93, %cst_24 {dimension_numbers = #tpu.dot_dimension_numbers<[2], [2], [1], [1], [0, 0, 0, 1, 1, 1], [0], [0]>} : vector<4x16x8xbf16>, vector<4x16x8xbf16>, vector<4x16x16xf32> -> vector<4x16x16xf32>
    %cst_25 = arith.constant 0.353553385 : f32
    %104 = vector.broadcast %cst_25 : f32 to vector<4x16x16xf32>
    %105 = arith.mulf %103, %104 : vector<4x16x16xf32>
    %106 = vector.shape_cast %58 : vector<16x16xf32> to vector<1x16x16xf32>
    %107 = vector.broadcast %106 : vector<1x16x16xf32> to vector<4x16x16xf32>
    %108 = arith.addf %105, %107 : vector<4x16x16xf32>
    %cst_26 = arith.constant dense<0xFF800000> : vector<4x16xf32>
    %109 = vector.multi_reduction <maximumf>, %108, %cst_26 [2] : vector<4x16x16xf32> to vector<4x16xf32>
    %110 = vector.shape_cast %109 : vector<4x16xf32> to vector<4x16x1xf32>
    %111 = vector.broadcast %110 : vector<4x16x1xf32> to vector<4x16x16xf32>
    %112 = arith.subf %108, %111 : vector<4x16x16xf32>
    %113 = math.exp %112 : vector<4x16x16xf32>
    %cst_27 = arith.constant dense<0.000000e+00> : vector<4x16xf32>
    %114 = vector.multi_reduction <add>, %113, %cst_27 [2] : vector<4x16x16xf32> to vector<4x16xf32>
    %115 = vector.shape_cast %114 : vector<4x16xf32> to vector<4x16x1xf32>
    %116 = tpu.reciprocal %115 {approx = true} : vector<4x16x1xf32> -> vector<4x16x1xf32>
    %117 = vector.broadcast %116 : vector<4x16x1xf32> to vector<4x16x16xf32>
    %118 = arith.mulf %113, %117 : vector<4x16x16xf32>
    %119 = arith.truncf %118 : vector<4x16x16xf32> to vector<4x16x16xbf16>
    %cst_28 = arith.constant dense<0.000000e+00> : vector<4x16x8xf32>
    %120 = tpu.matmul %119, %102, %cst_28 {dimension_numbers = #tpu.dot_dimension_numbers<[2], [1], [1], [2], [0, 0, 0, 1, 1, 2], [0], [0]>} : vector<4x16x16xbf16>, vector<4x16x8xbf16>, vector<4x16x8xf32> -> vector<4x16x8xf32>
    %121 = vector.extract_strided_slice %120 {offsets = [0, 0, 0], sizes = [1, 16, 8], strides = [1, 1, 1]} : vector<4x16x8xf32> to vector<1x16x8xf32>
    %122 = vector.shape_cast %121 : vector<1x16x8xf32> to vector<16x8xf32>
    %123 = vector.extract_strided_slice %120 {offsets = [1, 0, 0], sizes = [1, 16, 8], strides = [1, 1, 1]} : vector<4x16x8xf32> to vector<1x16x8xf32>
    %124 = vector.shape_cast %123 : vector<1x16x8xf32> to vector<16x8xf32>
    %125 = vector.extract_strided_slice %120 {offsets = [2, 0, 0], sizes = [1, 16, 8], strides = [1, 1, 1]} : vector<4x16x8xf32> to vector<1x16x8xf32>
    %126 = vector.shape_cast %125 : vector<1x16x8xf32> to vector<16x8xf32>
    %127 = vector.extract_strided_slice %120 {offsets = [3, 0, 0], sizes = [1, 16, 8], strides = [1, 1, 1]} : vector<4x16x8xf32> to vector<1x16x8xf32>
    %128 = vector.shape_cast %127 : vector<1x16x8xf32> to vector<16x8xf32>
    %129 = tpu.concatenate %122, %124, %126, %128 in 1 : vector<16x8xf32>, vector<16x8xf32>, vector<16x8xf32>, vector<16x8xf32> -> vector<16x32xf32>
    %c0_29 = arith.constant 0 : index
    %c0_30 = arith.constant 0 : index
    %c0_31 = arith.constant 0 : index
    %130 = vector.load %arg8[%c0_29, %c0_30, %c0_31] : memref<2x32x128xbf16, #tpu.memory_space<vmem>>, vector<1x32x128xbf16>
    %131 = vector.shape_cast %130 : vector<1x32x128xbf16> to vector<32x128xbf16>
    %132 = arith.truncf %129 : vector<16x32xf32> to vector<16x32xbf16>
    %cst_32 = arith.constant dense<0.000000e+00> : vector<16x128xf32>
    %133 = tpu.matmul %132, %131, %cst_32 {dimension_numbers = #tpu.dot_dimension_numbers<[1], [0], [0], [1], [0, 0, 1, 1], [], []>} : vector<16x32xbf16>, vector<32x128xbf16>, vector<16x128xf32> -> vector<16x128xf32>
    %134 = vector.broadcast %62 : vector<1x128xf32> to vector<16x128xf32>
    %135 = arith.addf %133, %134 : vector<16x128xf32>
    %136 = arith.addf %135, %50 : vector<16x128xf32>
    %cst_33 = arith.constant dense<0.000000e+00> : vector<16xf32>
    %137 = vector.multi_reduction <add>, %136, %cst_33 [1] : vector<16x128xf32> to vector<16xf32>
    %138 = vector.shape_cast %137 : vector<16xf32> to vector<16x1xf32>
    %cst_34 = arith.constant 3.125000e-02 : f32
    %139 = vector.broadcast %cst_34 : f32 to vector<16x1xf32>
    %140 = arith.mulf %138, %139 : vector<16x1xf32>
    %141 = arith.mulf %136, %136 : vector<16x128xf32>
    %cst_35 = arith.constant dense<0.000000e+00> : vector<16xf32>
    %142 = vector.multi_reduction <add>, %141, %cst_35 [1] : vector<16x128xf32> to vector<16xf32>
    %143 = vector.shape_cast %142 : vector<16xf32> to vector<16x1xf32>
    %cst_36 = arith.constant 3.125000e-02 : f32
    %144 = vector.broadcast %cst_36 : f32 to vector<16x1xf32>
    %145 = arith.mulf %143, %144 : vector<16x1xf32>
    %146 = arith.mulf %140, %140 : vector<16x1xf32>
    %147 = arith.subf %145, %146 : vector<16x1xf32>
    %148 = vector.broadcast %140 : vector<16x1xf32> to vector<16x128xf32>
    %149 = arith.subf %136, %148 : vector<16x128xf32>
    %cst_37 = arith.constant 9.99999996E-13 : f32
    %150 = vector.broadcast %cst_37 : f32 to vector<16x1xf32>
    %151 = arith.addf %147, %150 : vector<16x1xf32>
    %152 = math.rsqrt %151 : vector<16x1xf32>
    %153 = vector.broadcast %152 : vector<16x1xf32> to vector<16x128xf32>
    %154 = arith.mulf %149, %153 : vector<16x128xf32>
    %155 = vector.broadcast %63 : vector<1x128xf32> to vector<16x128xf32>
    %156 = arith.mulf %154, %155 : vector<16x128xf32>
    %157 = vector.broadcast %64 : vector<1x128xf32> to vector<16x128xf32>
    %158 = arith.addf %156, %157 : vector<16x128xf32>
    %c1 = arith.constant 1 : index
    %c0_38 = arith.constant 0 : index
    %c0_39 = arith.constant 0 : index
    %159 = vector.load %arg6[%c1, %c0_38, %c0_39] : memref<6x128x128xbf16, #tpu.memory_space<vmem>>, vector<1x128x128xbf16>
    %160 = vector.shape_cast %159 : vector<1x128x128xbf16> to vector<128x128xbf16>
    %161 = arith.truncf %158 : vector<16x128xf32> to vector<16x128xbf16>
    %cst_40 = arith.constant dense<0.000000e+00> : vector<16x128xf32>
    %162 = tpu.matmul %161, %160, %cst_40 {dimension_numbers = #tpu.dot_dimension_numbers<[1], [0], [0], [1], [0, 0, 1, 1], [], []>} : vector<16x128xbf16>, vector<128x128xbf16>, vector<16x128xf32> -> vector<16x128xf32>
    %163 = vector.broadcast %65 : vector<1x128xf32> to vector<16x128xf32>
    %164 = arith.addf %162, %163 : vector<16x128xf32>
    %165 = arith.mulf %164, %164 : vector<16x128xf32>
    %166 = arith.mulf %164, %165 : vector<16x128xf32>
    %cst_41 = arith.constant 4.471500e-02 : f32
    %167 = vector.broadcast %cst_41 : f32 to vector<16x128xf32>
    %168 = arith.mulf %167, %166 : vector<16x128xf32>
    %169 = arith.addf %164, %168 : vector<16x128xf32>
    %cst_42 = arith.constant 0.797884583 : f32
    %170 = vector.broadcast %cst_42 : f32 to vector<16x128xf32>
    %171 = arith.mulf %170, %169 : vector<16x128xf32>
    %172 = math.tanh %171 : vector<16x128xf32>
    %cst_43 = arith.constant 1.000000e+00 : f32
    %173 = vector.broadcast %cst_43 : f32 to vector<16x128xf32>
    %174 = arith.addf %173, %172 : vector<16x128xf32>
    %cst_44 = arith.constant 5.000000e-01 : f32
    %175 = vector.broadcast %cst_44 : f32 to vector<16x128xf32>
    %176 = arith.mulf %175, %174 : vector<16x128xf32>
    %177 = arith.mulf %164, %176 : vector<16x128xf32>
    %c2 = arith.constant 2 : index
    %c0_45 = arith.constant 0 : index
    %c0_46 = arith.constant 0 : index
    %178 = vector.load %arg6[%c2, %c0_45, %c0_46] : memref<6x128x128xbf16, #tpu.memory_space<vmem>>, vector<1x128x128xbf16>
    %179 = vector.shape_cast %178 : vector<1x128x128xbf16> to vector<128x128xbf16>
    %180 = arith.truncf %177 : vector<16x128xf32> to vector<16x128xbf16>
    %cst_47 = arith.constant dense<0.000000e+00> : vector<16x128xf32>
    %181 = tpu.matmul %180, %179, %cst_47 {dimension_numbers = #tpu.dot_dimension_numbers<[1], [0], [0], [1], [0, 0, 1, 1], [], []>} : vector<16x128xbf16>, vector<128x128xbf16>, vector<16x128xf32> -> vector<16x128xf32>
    %182 = vector.broadcast %66 : vector<1x128xf32> to vector<16x128xf32>
    %183 = arith.addf %181, %182 : vector<16x128xf32>
    %184 = arith.addf %183, %158 : vector<16x128xf32>
    %cst_48 = arith.constant dense<0.000000e+00> : vector<16xf32>
    %185 = vector.multi_reduction <add>, %184, %cst_48 [1] : vector<16x128xf32> to vector<16xf32>
    %186 = vector.shape_cast %185 : vector<16xf32> to vector<16x1xf32>
    %cst_49 = arith.constant 3.125000e-02 : f32
    %187 = vector.broadcast %cst_49 : f32 to vector<16x1xf32>
    %188 = arith.mulf %186, %187 : vector<16x1xf32>
    %189 = arith.mulf %184, %184 : vector<16x128xf32>
    %cst_50 = arith.constant dense<0.000000e+00> : vector<16xf32>
    %190 = vector.multi_reduction <add>, %189, %cst_50 [1] : vector<16x128xf32> to vector<16xf32>
    %191 = vector.shape_cast %190 : vector<16xf32> to vector<16x1xf32>
    %cst_51 = arith.constant 3.125000e-02 : f32
    %192 = vector.broadcast %cst_51 : f32 to vector<16x1xf32>
    %193 = arith.mulf %191, %192 : vector<16x1xf32>
    %194 = arith.mulf %188, %188 : vector<16x1xf32>
    %195 = arith.subf %193, %194 : vector<16x1xf32>
    %196 = vector.broadcast %188 : vector<16x1xf32> to vector<16x128xf32>
    %197 = arith.subf %184, %196 : vector<16x128xf32>
    %cst_52 = arith.constant 9.99999996E-13 : f32
    %198 = vector.broadcast %cst_52 : f32 to vector<16x1xf32>
    %199 = arith.addf %195, %198 : vector<16x1xf32>
    %200 = math.rsqrt %199 : vector<16x1xf32>
    %201 = vector.broadcast %200 : vector<16x1xf32> to vector<16x128xf32>
    %202 = arith.mulf %197, %201 : vector<16x128xf32>
    %203 = vector.broadcast %67 : vector<1x128xf32> to vector<16x128xf32>
    %204 = arith.mulf %202, %203 : vector<16x128xf32>
    %205 = vector.broadcast %68 : vector<1x128xf32> to vector<16x128xf32>
    %206 = arith.addf %204, %205 : vector<16x128xf32>
    %c1_53 = arith.constant 1 : index
    %c0_54 = arith.constant 0 : index
    %c0_55 = arith.constant 0 : index
    %207 = vector.load %arg7[%c1_53, %c0_54, %c0_55] : memref<2x8x128xf32, #tpu.memory_space<vmem>>, vector<1x8x128xf32>
    %208 = vector.shape_cast %207 : vector<1x8x128xf32> to vector<8x128xf32>
    %209 = vector.extract_strided_slice %208 {offsets = [0, 0], sizes = [1, 128], strides = [1, 1]} : vector<8x128xf32> to vector<1x128xf32>
    %210 = vector.extract_strided_slice %208 {offsets = [1, 0], sizes = [1, 128], strides = [1, 1]} : vector<8x128xf32> to vector<1x128xf32>
    %211 = vector.extract_strided_slice %208 {offsets = [2, 0], sizes = [1, 128], strides = [1, 1]} : vector<8x128xf32> to vector<1x128xf32>
    %212 = vector.extract_strided_slice %208 {offsets = [3, 0], sizes = [1, 128], strides = [1, 1]} : vector<8x128xf32> to vector<1x128xf32>
    %213 = vector.extract_strided_slice %208 {offsets = [4, 0], sizes = [1, 128], strides = [1, 1]} : vector<8x128xf32> to vector<1x128xf32>
    %214 = vector.extract_strided_slice %208 {offsets = [5, 0], sizes = [1, 128], strides = [1, 1]} : vector<8x128xf32> to vector<1x128xf32>
    %215 = vector.extract_strided_slice %208 {offsets = [6, 0], sizes = [1, 128], strides = [1, 1]} : vector<8x128xf32> to vector<1x128xf32>
    %216 = vector.extract_strided_slice %208 {offsets = [7, 0], sizes = [1, 128], strides = [1, 1]} : vector<8x128xf32> to vector<1x128xf32>
    %c3 = arith.constant 3 : index
    %c0_56 = arith.constant 0 : index
    %c0_57 = arith.constant 0 : index
    %217 = vector.load %arg6[%c3, %c0_56, %c0_57] : memref<6x128x128xbf16, #tpu.memory_space<vmem>>, vector<1x128x128xbf16>
    %218 = vector.shape_cast %217 : vector<1x128x128xbf16> to vector<128x128xbf16>
    %219 = arith.truncf %206 : vector<16x128xf32> to vector<16x128xbf16>
    %cst_58 = arith.constant dense<0.000000e+00> : vector<16x128xf32>
    %220 = tpu.matmul %219, %218, %cst_58 {dimension_numbers = #tpu.dot_dimension_numbers<[1], [0], [0], [1], [0, 0, 1, 1], [], []>} : vector<16x128xbf16>, vector<128x128xbf16>, vector<16x128xf32> -> vector<16x128xf32>
    %221 = vector.broadcast %209 : vector<1x128xf32> to vector<16x128xf32>
    %222 = arith.addf %220, %221 : vector<16x128xf32>
    %223 = arith.truncf %222 : vector<16x128xf32> to vector<16x128xbf16>
    %224 = vector.extract_strided_slice %223 {offsets = [0, 0], sizes = [16, 8], strides = [1, 1]} : vector<16x128xbf16> to vector<16x8xbf16>
    %225 = vector.extract_strided_slice %223 {offsets = [0, 8], sizes = [16, 8], strides = [1, 1]} : vector<16x128xbf16> to vector<16x8xbf16>
    %226 = vector.extract_strided_slice %223 {offsets = [0, 16], sizes = [16, 8], strides = [1, 1]} : vector<16x128xbf16> to vector<16x8xbf16>
    %227 = vector.extract_strided_slice %223 {offsets = [0, 24], sizes = [16, 8], strides = [1, 1]} : vector<16x128xbf16> to vector<16x8xbf16>
    %228 = vector.shape_cast %224 : vector<16x8xbf16> to vector<1x16x8xbf16>
    %229 = vector.shape_cast %225 : vector<16x8xbf16> to vector<1x16x8xbf16>
    %230 = vector.shape_cast %226 : vector<16x8xbf16> to vector<1x16x8xbf16>
    %231 = vector.shape_cast %227 : vector<16x8xbf16> to vector<1x16x8xbf16>
    %232 = tpu.concatenate %228, %229, %230, %231 in 0 : vector<1x16x8xbf16>, vector<1x16x8xbf16>, vector<1x16x8xbf16>, vector<1x16x8xbf16> -> vector<4x16x8xbf16>
    %233 = vector.extract_strided_slice %223 {offsets = [0, 32], sizes = [16, 8], strides = [1, 1]} : vector<16x128xbf16> to vector<16x8xbf16>
    %234 = vector.extract_strided_slice %223 {offsets = [0, 40], sizes = [16, 8], strides = [1, 1]} : vector<16x128xbf16> to vector<16x8xbf16>
    %235 = vector.extract_strided_slice %223 {offsets = [0, 48], sizes = [16, 8], strides = [1, 1]} : vector<16x128xbf16> to vector<16x8xbf16>
    %236 = vector.extract_strided_slice %223 {offsets = [0, 56], sizes = [16, 8], strides = [1, 1]} : vector<16x128xbf16> to vector<16x8xbf16>
    %237 = vector.shape_cast %233 : vector<16x8xbf16> to vector<1x16x8xbf16>
    %238 = vector.shape_cast %234 : vector<16x8xbf16> to vector<1x16x8xbf16>
    %239 = vector.shape_cast %235 : vector<16x8xbf16> to vector<1x16x8xbf16>
    %240 = vector.shape_cast %236 : vector<16x8xbf16> to vector<1x16x8xbf16>
    %241 = tpu.concatenate %237, %238, %239, %240 in 0 : vector<1x16x8xbf16>, vector<1x16x8xbf16>, vector<1x16x8xbf16>, vector<1x16x8xbf16> -> vector<4x16x8xbf16>
    %242 = vector.extract_strided_slice %223 {offsets = [0, 64], sizes = [16, 8], strides = [1, 1]} : vector<16x128xbf16> to vector<16x8xbf16>
    %243 = vector.extract_strided_slice %223 {offsets = [0, 72], sizes = [16, 8], strides = [1, 1]} : vector<16x128xbf16> to vector<16x8xbf16>
    %244 = vector.extract_strided_slice %223 {offsets = [0, 80], sizes = [16, 8], strides = [1, 1]} : vector<16x128xbf16> to vector<16x8xbf16>
    %245 = vector.extract_strided_slice %223 {offsets = [0, 88], sizes = [16, 8], strides = [1, 1]} : vector<16x128xbf16> to vector<16x8xbf16>
    %246 = vector.shape_cast %242 : vector<16x8xbf16> to vector<1x16x8xbf16>
    %247 = vector.shape_cast %243 : vector<16x8xbf16> to vector<1x16x8xbf16>
    %248 = vector.shape_cast %244 : vector<16x8xbf16> to vector<1x16x8xbf16>
    %249 = vector.shape_cast %245 : vector<16x8xbf16> to vector<1x16x8xbf16>
    %250 = tpu.concatenate %246, %247, %248, %249 in 0 : vector<1x16x8xbf16>, vector<1x16x8xbf16>, vector<1x16x8xbf16>, vector<1x16x8xbf16> -> vector<4x16x8xbf16>
    %cst_59 = arith.constant dense<0.000000e+00> : vector<4x16x16xf32>
    %251 = tpu.matmul %232, %241, %cst_59 {dimension_numbers = #tpu.dot_dimension_numbers<[2], [2], [1], [1], [0, 0, 0, 1, 1, 1], [0], [0]>} : vector<4x16x8xbf16>, vector<4x16x8xbf16>, vector<4x16x16xf32> -> vector<4x16x16xf32>
    %cst_60 = arith.constant 0.353553385 : f32
    %252 = vector.broadcast %cst_60 : f32 to vector<4x16x16xf32>
    %253 = arith.mulf %251, %252 : vector<4x16x16xf32>
    %254 = vector.shape_cast %58 : vector<16x16xf32> to vector<1x16x16xf32>
    %255 = vector.broadcast %254 : vector<1x16x16xf32> to vector<4x16x16xf32>
    %256 = arith.addf %253, %255 : vector<4x16x16xf32>
    %cst_61 = arith.constant dense<0xFF800000> : vector<4x16xf32>
    %257 = vector.multi_reduction <maximumf>, %256, %cst_61 [2] : vector<4x16x16xf32> to vector<4x16xf32>
    %258 = vector.shape_cast %257 : vector<4x16xf32> to vector<4x16x1xf32>
    %259 = vector.broadcast %258 : vector<4x16x1xf32> to vector<4x16x16xf32>
    %260 = arith.subf %256, %259 : vector<4x16x16xf32>
    %261 = math.exp %260 : vector<4x16x16xf32>
    %cst_62 = arith.constant dense<0.000000e+00> : vector<4x16xf32>
    %262 = vector.multi_reduction <add>, %261, %cst_62 [2] : vector<4x16x16xf32> to vector<4x16xf32>
    %263 = vector.shape_cast %262 : vector<4x16xf32> to vector<4x16x1xf32>
    %264 = tpu.reciprocal %263 {approx = true} : vector<4x16x1xf32> -> vector<4x16x1xf32>
    %265 = vector.broadcast %264 : vector<4x16x1xf32> to vector<4x16x16xf32>
    %266 = arith.mulf %261, %265 : vector<4x16x16xf32>
    %267 = arith.truncf %266 : vector<4x16x16xf32> to vector<4x16x16xbf16>
    %cst_63 = arith.constant dense<0.000000e+00> : vector<4x16x8xf32>
    %268 = tpu.matmul %267, %250, %cst_63 {dimension_numbers = #tpu.dot_dimension_numbers<[2], [1], [1], [2], [0, 0, 0, 1, 1, 2], [0], [0]>} : vector<4x16x16xbf16>, vector<4x16x8xbf16>, vector<4x16x8xf32> -> vector<4x16x8xf32>
    %269 = vector.extract_strided_slice %268 {offsets = [0, 0, 0], sizes = [1, 16, 8], strides = [1, 1, 1]} : vector<4x16x8xf32> to vector<1x16x8xf32>
    %270 = vector.shape_cast %269 : vector<1x16x8xf32> to vector<16x8xf32>
    %271 = vector.extract_strided_slice %268 {offsets = [1, 0, 0], sizes = [1, 16, 8], strides = [1, 1, 1]} : vector<4x16x8xf32> to vector<1x16x8xf32>
    %272 = vector.shape_cast %271 : vector<1x16x8xf32> to vector<16x8xf32>
    %273 = vector.extract_strided_slice %268 {offsets = [2, 0, 0], sizes = [1, 16, 8], strides = [1, 1, 1]} : vector<4x16x8xf32> to vector<1x16x8xf32>
    %274 = vector.shape_cast %273 : vector<1x16x8xf32> to vector<16x8xf32>
    %275 = vector.extract_strided_slice %268 {offsets = [3, 0, 0], sizes = [1, 16, 8], strides = [1, 1, 1]} : vector<4x16x8xf32> to vector<1x16x8xf32>
    %276 = vector.shape_cast %275 : vector<1x16x8xf32> to vector<16x8xf32>
    %277 = tpu.concatenate %270, %272, %274, %276 in 1 : vector<16x8xf32>, vector<16x8xf32>, vector<16x8xf32>, vector<16x8xf32> -> vector<16x32xf32>
    %c1_64 = arith.constant 1 : index
    %c0_65 = arith.constant 0 : index
    %c0_66 = arith.constant 0 : index
    %278 = vector.load %arg8[%c1_64, %c0_65, %c0_66] : memref<2x32x128xbf16, #tpu.memory_space<vmem>>, vector<1x32x128xbf16>
    %279 = vector.shape_cast %278 : vector<1x32x128xbf16> to vector<32x128xbf16>
    %280 = arith.truncf %277 : vector<16x32xf32> to vector<16x32xbf16>
    %cst_67 = arith.constant dense<0.000000e+00> : vector<16x128xf32>
    %281 = tpu.matmul %280, %279, %cst_67 {dimension_numbers = #tpu.dot_dimension_numbers<[1], [0], [0], [1], [0, 0, 1, 1], [], []>} : vector<16x32xbf16>, vector<32x128xbf16>, vector<16x128xf32> -> vector<16x128xf32>
    %282 = vector.broadcast %210 : vector<1x128xf32> to vector<16x128xf32>
    %283 = arith.addf %281, %282 : vector<16x128xf32>
    %284 = arith.addf %283, %206 : vector<16x128xf32>
    %cst_68 = arith.constant dense<0.000000e+00> : vector<16xf32>
    %285 = vector.multi_reduction <add>, %284, %cst_68 [1] : vector<16x128xf32> to vector<16xf32>
    %286 = vector.shape_cast %285 : vector<16xf32> to vector<16x1xf32>
    %cst_69 = arith.constant 3.125000e-02 : f32
    %287 = vector.broadcast %cst_69 : f32 to vector<16x1xf32>
    %288 = arith.mulf %286, %287 : vector<16x1xf32>
    %289 = arith.mulf %284, %284 : vector<16x128xf32>
    %cst_70 = arith.constant dense<0.000000e+00> : vector<16xf32>
    %290 = vector.multi_reduction <add>, %289, %cst_70 [1] : vector<16x128xf32> to vector<16xf32>
    %291 = vector.shape_cast %290 : vector<16xf32> to vector<16x1xf32>
    %cst_71 = arith.constant 3.125000e-02 : f32
    %292 = vector.broadcast %cst_71 : f32 to vector<16x1xf32>
    %293 = arith.mulf %291, %292 : vector<16x1xf32>
    %294 = arith.mulf %288, %288 : vector<16x1xf32>
    %295 = arith.subf %293, %294 : vector<16x1xf32>
    %296 = vector.broadcast %288 : vector<16x1xf32> to vector<16x128xf32>
    %297 = arith.subf %284, %296 : vector<16x128xf32>
    %cst_72 = arith.constant 9.99999996E-13 : f32
    %298 = vector.broadcast %cst_72 : f32 to vector<16x1xf32>
    %299 = arith.addf %295, %298 : vector<16x1xf32>
    %300 = math.rsqrt %299 : vector<16x1xf32>
    %301 = vector.broadcast %300 : vector<16x1xf32> to vector<16x128xf32>
    %302 = arith.mulf %297, %301 : vector<16x128xf32>
    %303 = vector.broadcast %211 : vector<1x128xf32> to vector<16x128xf32>
    %304 = arith.mulf %302, %303 : vector<16x128xf32>
    %305 = vector.broadcast %212 : vector<1x128xf32> to vector<16x128xf32>
    %306 = arith.addf %304, %305 : vector<16x128xf32>
    %c4 = arith.constant 4 : index
    %c0_73 = arith.constant 0 : index
    %c0_74 = arith.constant 0 : index
    %307 = vector.load %arg6[%c4, %c0_73, %c0_74] : memref<6x128x128xbf16, #tpu.memory_space<vmem>>, vector<1x128x128xbf16>
    %308 = vector.shape_cast %307 : vector<1x128x128xbf16> to vector<128x128xbf16>
    %309 = arith.truncf %306 : vector<16x128xf32> to vector<16x128xbf16>
    %cst_75 = arith.constant dense<0.000000e+00> : vector<16x128xf32>
    %310 = tpu.matmul %309, %308, %cst_75 {dimension_numbers = #tpu.dot_dimension_numbers<[1], [0], [0], [1], [0, 0, 1, 1], [], []>} : vector<16x128xbf16>, vector<128x128xbf16>, vector<16x128xf32> -> vector<16x128xf32>
    %311 = vector.broadcast %213 : vector<1x128xf32> to vector<16x128xf32>
    %312 = arith.addf %310, %311 : vector<16x128xf32>
    %313 = arith.mulf %312, %312 : vector<16x128xf32>
    %314 = arith.mulf %312, %313 : vector<16x128xf32>
    %cst_76 = arith.constant 4.471500e-02 : f32
    %315 = vector.broadcast %cst_76 : f32 to vector<16x128xf32>
    %316 = arith.mulf %315, %314 : vector<16x128xf32>
    %317 = arith.addf %312, %316 : vector<16x128xf32>
    %cst_77 = arith.constant 0.797884583 : f32
    %318 = vector.broadcast %cst_77 : f32 to vector<16x128xf32>
    %319 = arith.mulf %318, %317 : vector<16x128xf32>
    %320 = math.tanh %319 : vector<16x128xf32>
    %cst_78 = arith.constant 1.000000e+00 : f32
    %321 = vector.broadcast %cst_78 : f32 to vector<16x128xf32>
    %322 = arith.addf %321, %320 : vector<16x128xf32>
    %cst_79 = arith.constant 5.000000e-01 : f32
    %323 = vector.broadcast %cst_79 : f32 to vector<16x128xf32>
    %324 = arith.mulf %323, %322 : vector<16x128xf32>
    %325 = arith.mulf %312, %324 : vector<16x128xf32>
    %c5 = arith.constant 5 : index
    %c0_80 = arith.constant 0 : index
    %c0_81 = arith.constant 0 : index
    %326 = vector.load %arg6[%c5, %c0_80, %c0_81] : memref<6x128x128xbf16, #tpu.memory_space<vmem>>, vector<1x128x128xbf16>
    %327 = vector.shape_cast %326 : vector<1x128x128xbf16> to vector<128x128xbf16>
    %328 = arith.truncf %325 : vector<16x128xf32> to vector<16x128xbf16>
    %cst_82 = arith.constant dense<0.000000e+00> : vector<16x128xf32>
    %329 = tpu.matmul %328, %327, %cst_82 {dimension_numbers = #tpu.dot_dimension_numbers<[1], [0], [0], [1], [0, 0, 1, 1], [], []>} : vector<16x128xbf16>, vector<128x128xbf16>, vector<16x128xf32> -> vector<16x128xf32>
    %330 = vector.broadcast %214 : vector<1x128xf32> to vector<16x128xf32>
    %331 = arith.addf %329, %330 : vector<16x128xf32>
    %332 = arith.addf %331, %306 : vector<16x128xf32>
    %cst_83 = arith.constant dense<0.000000e+00> : vector<16xf32>
    %333 = vector.multi_reduction <add>, %332, %cst_83 [1] : vector<16x128xf32> to vector<16xf32>
    %334 = vector.shape_cast %333 : vector<16xf32> to vector<16x1xf32>
    %cst_84 = arith.constant 3.125000e-02 : f32
    %335 = vector.broadcast %cst_84 : f32 to vector<16x1xf32>
    %336 = arith.mulf %334, %335 : vector<16x1xf32>
    %337 = arith.mulf %332, %332 : vector<16x128xf32>
    %cst_85 = arith.constant dense<0.000000e+00> : vector<16xf32>
    %338 = vector.multi_reduction <add>, %337, %cst_85 [1] : vector<16x128xf32> to vector<16xf32>
    %339 = vector.shape_cast %338 : vector<16xf32> to vector<16x1xf32>
    %cst_86 = arith.constant 3.125000e-02 : f32
    %340 = vector.broadcast %cst_86 : f32 to vector<16x1xf32>
    %341 = arith.mulf %339, %340 : vector<16x1xf32>
    %342 = arith.mulf %336, %336 : vector<16x1xf32>
    %343 = arith.subf %341, %342 : vector<16x1xf32>
    %344 = vector.broadcast %336 : vector<16x1xf32> to vector<16x128xf32>
    %345 = arith.subf %332, %344 : vector<16x128xf32>
    %cst_87 = arith.constant 9.99999996E-13 : f32
    %346 = vector.broadcast %cst_87 : f32 to vector<16x1xf32>
    %347 = arith.addf %343, %346 : vector<16x1xf32>
    %348 = math.rsqrt %347 : vector<16x1xf32>
    %349 = vector.broadcast %348 : vector<16x1xf32> to vector<16x128xf32>
    %350 = arith.mulf %345, %349 : vector<16x128xf32>
    %351 = vector.broadcast %215 : vector<1x128xf32> to vector<16x128xf32>
    %352 = arith.mulf %350, %351 : vector<16x128xf32>
    %353 = vector.broadcast %216 : vector<1x128xf32> to vector<16x128xf32>
    %354 = arith.addf %352, %353 : vector<16x128xf32>
    %355 = tpu.iota {dimensions = array<i32: 1>} : vector<2x16xi32>
    %356 = tpu.iota {dimensions = array<i32: 0>} : vector<2x16xi32>
    %c8_i32 = arith.constant 8 : i32
    %357 = vector.broadcast %c8_i32 : i32 to vector<2x16xi32>
    %358 = arith.muli %356, %357 : vector<2x16xi32>
    %359 = arith.cmpi eq, %355, %358 : vector<2x16xi32>
    %360 = arith.extui %359 : vector<2x16xi1> to vector<2x16xi32>
    %361 = arith.sitofp %360 : vector<2x16xi32> to vector<2x16xf32>
    %362 = arith.truncf %361 : vector<2x16xf32> to vector<2x16xbf16>
    %363 = arith.truncf %354 : vector<16x128xf32> to vector<16x128xbf16>
    %cst_88 = arith.constant dense<0.000000e+00> : vector<2x128xf32>
    %364 = tpu.matmul %362, %363, %cst_88 {dimension_numbers = #tpu.dot_dimension_numbers<[1], [0], [0], [1], [0, 0, 1, 1], [], []>} : vector<2x16xbf16>, vector<16x128xbf16>, vector<2x128xf32> -> vector<2x128xf32>
    %c1_89 = arith.constant 1 : index
    %c0_90 = arith.constant 0 : index
    %c0_91 = arith.constant 0 : index
    %365 = vector.load %arg4[%c1_89, %c0_90, %c0_91] : memref<3x128x128xbf16, #tpu.memory_space<vmem>>, vector<1x128x128xbf16>
    %366 = vector.shape_cast %365 : vector<1x128x128xbf16> to vector<128x128xbf16>
    %367 = arith.truncf %364 : vector<2x128xf32> to vector<2x128xbf16>
    %cst_92 = arith.constant dense<0.000000e+00> : vector<2x128xf32>
    %368 = tpu.matmul %367, %366, %cst_92 {dimension_numbers = #tpu.dot_dimension_numbers<[1], [0], [0], [1], [0, 0, 1, 1], [], []>} : vector<2x128xbf16>, vector<128x128xbf16>, vector<2x128xf32> -> vector<2x128xf32>
    %369 = vector.broadcast %3 : vector<1x128xf32> to vector<2x128xf32>
    %370 = arith.addf %368, %369 : vector<2x128xf32>
    %371 = math.tanh %370 : vector<2x128xf32>
    %c2_93 = arith.constant 2 : index
    %c0_94 = arith.constant 0 : index
    %c0_95 = arith.constant 0 : index
    %372 = vector.load %arg4[%c2_93, %c0_94, %c0_95] : memref<3x128x128xbf16, #tpu.memory_space<vmem>>, vector<1x128x128xbf16>
    %373 = vector.shape_cast %372 : vector<1x128x128xbf16> to vector<128x128xbf16>
    %374 = arith.truncf %371 : vector<2x128xf32> to vector<2x128xbf16>
    %cst_96 = arith.constant dense<0.000000e+00> : vector<2x128xf32>
    %375 = tpu.matmul %374, %373, %cst_96 {dimension_numbers = #tpu.dot_dimension_numbers<[1], [0], [0], [1], [0, 0, 1, 1], [], []>} : vector<2x128xbf16>, vector<128x128xbf16>, vector<2x128xf32> -> vector<2x128xf32>
    %c0_97 = arith.constant 0 : index
    %c0_98 = arith.constant 0 : index
    %376 = vector.load %arg2[%c0_97, %c0_98] : memref<2x1xf32, #tpu.memory_space<vmem>>, vector<2x1xf32>
    %377 = vector.broadcast %376 : vector<2x1xf32> to vector<2x128xf32>
    %378 = vector.broadcast %4 : vector<1x128xf32> to vector<2x128xf32>
    %379 = arith.mulf %377, %378 : vector<2x128xf32>
    %380 = arith.addf %375, %379 : vector<2x128xf32>
    %381 = vector.broadcast %5 : vector<1x128xf32> to vector<2x128xf32>
    %382 = arith.addf %380, %381 : vector<2x128xf32>
    %c0_99 = arith.constant 0 : index
    %c0_100 = arith.constant 0 : index
    %383 = vector.load %arg9[%c0_99, %c0_100] : memref<2x128xf32, #tpu.memory_space<vmem>>, vector<2x128xf32>
    tpu.vector_store %arg9[%c0_99, %c0_100], %382 {strides = array<i32>} : memref<2x128xf32, #tpu.memory_space<vmem>>, vector<2x128xf32>,
    return
  }
}

</mosaic_0001>

<bundles_post_ra>
// kernel: sentiment_forward.1
= control target key start
LH: loop header
LB: loop body
LE: loop exit
PB: predicated region body
PF: predicated region fallthrough
CT: control target
= control target key end

     0   :  { %14 = vsyncpa [#allocation3], 0  ;;  %s4008_s0 = inlined_call_operand.vmem [shape: s32[16,2], index: 0, kind: input, shape index: {}]   ;;  %s4009_s1 = inlined_call_operand.vmem [shape: s32[2,16], index: 1, kind: input, shape index: {}]   ;;  %s4010_s2 = inlined_call_operand.vmem [shape: f32[2,1], index: 2, kind: input, shape index: {}]   ;;  %s4011_s3 = inlined_call_operand.vmem [shape: f32[8,128], index: 3, kind: input, shape index: {}]   ;;  %s4012_s4 = inlined_call_operand.hbm [shape: bf16[3,128,128], index: 4, kind: input, shape index: {}]   ;;  %s4013_s5 = inlined_call_operand.vmem [shape: f32[8,128], index: 5, kind: input, shape index: {}]   ;;  %s4014_s6 = inlined_call_operand.hbm [shape: bf16[6,128,128], index: 6, kind: input, shape index: {}]   ;;  %s4015_s7 = inlined_call_operand.vmem [shape: f32[2,8,128], index: 7, kind: input, shape index: {}]   ;;  %s4016_s8 = inlined_call_operand.vmem [shape: bf16[2,32,128], index: 8, kind: input, shape index: {}]   ;;  %s4017_s9 = inlined_call_operand.hbm [shape: f32[2,128], index: 9, kind: output, shape index: {}]  }
   0x1   :  { %15 = vsyncpa [#allocation6], 0 }
   0x2   :  { %16 = vsyncpa [#allocation4], 0  ;;  %s3428_s30 = smov [#allocation2]   ;;  %s3356_s13 = scalar_lea.hbm %s4012_s4, 3072 }
   0x3   :  { %s30_s10 = sshll.u32 %s3428_s30, 4  ;;  %p3357_p0 = scmp.ne.s32.totalorder %s4012_s4, %s3356_s13  ;;  %s31_s10 = int_to_ptr.vmem [resolvable:$true] %s30_s10 }
   0x4   :  { %p3360_p1 = scmp.lt.u32.totalorder %s3356_s13, %s4012_s4 }
   0x6   :  { %p3362_p2 = pnand %p3360_p1, %p3357_p0 }
   0x8   :  { %3365 = shalt.err (!%p3362_p2)
}
   0x9   :  { %s3366_s18 = scalar_lea.vmem %s31_s10, 3072  ;;  %p3371_p4 = scmp.lt.s32.totalorder %s31_s10, %s31_s10 }
   0xa   :  { %p3367_p3 = scmp.ne.s32.totalorder %s31_s10, %s3366_s18  ;;  %p3372_p5 = scmp.lt.s32.totalorder %s3366_s18, %s3366_s18 }
   0xc   :  { %p3373_p6 = por %p3372_p5, %p3371_p4 }
   0xe   :  { %p3374_p7 = pnand %p3373_p6, %p3367_p3 }
  0x10   :  { %3377 = shalt.err (!%p3374_p7)
}
  0x11   :  { %s3429_s19 = smov 64   ;;  %s3430_s20 = smov 4  }
  0x12   :  { %36 = dma.hbm_to_vmem [thread:$0]  %s4012_s4, 3072, %s31_s10, [#allocation3], %s3429_s19, %s3429_s19, %s3430_s20  }
  0x13   :  { %s3431_s23 = smov [#allocation5]   ;;  %s3378_s27 = scalar_lea.hbm %s4014_s6, 6144 }
  0x14   :  { %s44_s24 = sshll.u32 %s3431_s23, 4  ;;  %p3379_p8 = scmp.ne.s32.totalorder %s4014_s6, %s3378_s27  ;;  %s45_s24 = int_to_ptr.vmem [resolvable:$true] %s44_s24 }
  0x15   :  { %p3382_p9 = scmp.lt.u32.totalorder %s3378_s27, %s4014_s6 }
  0x17   :  { %p3384_p10 = pnand %p3382_p9, %p3379_p8 }
  0x19   :  { %3387 = shalt.err (!%p3384_p10)
}
  0x1a   :  { %s3388_s12 = scalar_lea.vmem %s45_s24, 6144  ;;  %p3393_p12 = scmp.lt.s32.totalorder %s45_s24, %s45_s24 }
  0x1b   :  { %p3389_p11 = scmp.ne.s32.totalorder %s45_s24, %s3388_s12  ;;  %p3394_p13 = scmp.lt.s32.totalorder %s3388_s12, %s3388_s12 }
  0x1d   :  { %p3395_p0 = por %p3394_p13, %p3393_p12 }
  0x1f   :  { %p3396_p1 = pnand %p3395_p0, %p3389_p11 }
  0x21   :  { %3399 = shalt.err (!%p3396_p1)
}
  0x22   :  { %50 = dma.hbm_to_vmem [thread:$0]  %s4014_s6, 6144, %s45_s24, [#allocation6], %s3429_s19, %s3429_s19, %s3430_s20  }
  0x23   :  { %3422 = dma.done.wait [#allocation3], 3072  }
  0x24   :  { %3423 = vsyncadd [#allocation3], 4294964224 }
  0x25   :  { %3424 = dma.done.wait [#allocation6], 6144  }
  0x26   :  { %3425 = vsyncadd [#allocation6], 4294961152  ;;  %v3432_v0 = vmov 0   ;;  %v3433_v1 = vmov 0.0   ;;  %v3530_v2 = vld [vmem:[%s4008_s0] sm:$0xff]  ;;  %v3536_v4 = vld [vmem:[%s4008_s0 + $0x8] sm:$0xff]  ;;  %v67_v12 = vlaneseq }
  0x27   :  { %3152 = vset.pattern.permute.xlu0 %v3432_v0  ;;  %2836 = vmatprep.subr.bf16.mxu0 %v3433_v1  ;;  %v3185_v3 = vld [vmem:[#allocation2] sm:$0xff]   ;;  %v3186_v5 = vld [vmem:[#allocation2 + $0x8] sm:$0xff]   ;;  %vm3434_vm0 = vmmov 0   ;;  %v3187_v6 = vld [vmem:[#allocation2 + $0x10] sm:$0xff]   ;;  %v3435_v16 = vmov 1.0|1.0  }
  0x28   :  { %2856 = vmatprep.subr.bf16.mxu1 %v3433_v1  ;;  %70 = vperm.xlu0 %3152, %v3530_v2   ;;  %v3188_v7 = vld [vmem:[#allocation2 + $0x18] sm:$0xff]   ;;  %v3189_v8 = vld [vmem:[#allocation2 + $0x20] sm:$0xff]   ;;  %v3190_v9 = vld [vmem:[#allocation2 + $0x28] sm:$0xff]   ;;  %v3551_v14 = vand.u32 127, %v67_v12  ;;  %v3568_v48 = vshrl.u32 %v67_v12, 7  ;;  %s3436_s21 = smov 120  }
  0x29   :  { %2837 = vmatpush3.bf16.msra.mxu0 %v3185_v3  ;;  %2852 = vmatprep.mubr.msk.bf16.mxu0 %vm3434_vm0, %v3433_v1  ;;  %v3191_v10 = vld [vmem:[#allocation2 + $0x30] sm:$0xff]   ;;  %v3192_v11 = vld [vmem:[#allocation2 + $0x38] sm:$0xff]   ;;  %v187_v17 = vld [vmem:[%s4011_s3] sm:$0xff]  ;;  %s3437_s22 = smov 112   ;;  %s3438_s23 = smov 104   ;;  %vm371_vm4 = vcmask 64512  }
  0x2a   :  { %2838 = vmatprep.subr.bf16.mxu0 %v3433_v1  ;;  %2872 = vmatprep.mubr.msk.bf16.mxu1 %vm3434_vm0, %v3433_v1  ;;  %v3193_v26 = vld [vmem:[#allocation5] sm:$0xff]   ;;  %v3194_v27 = vld [vmem:[#allocation5 + $0x8] sm:$0xff]   ;;  %v3195_v28 = vld [vmem:[#allocation5 + $0x10] sm:$0xff]   ;;  %v3571_v49 = vsub.s32 0, %v3568_v48  ;;  %v3578_v55 = vsub.s32 1, %v3568_v48  ;;  %s3440_s24 = smov 96  }
  0x2b   :  { %2857 = vmatpush3.bf16.msra.mxu1 %v3193_v26  ;;  %v3196_v29 = vld [vmem:[#allocation5 + $0x18] sm:$0xff]   ;;  %v3197_v30 = vld [vmem:[#allocation5 + $0x20] sm:$0xff]   ;;  %v3198_v31 = vld [vmem:[#allocation5 + $0x28] sm:$0xff]   ;;  %vm582_vm11 = vcmask 130048   ;;  %s3442_s30 = smov 8   ;;  %s3443_s11 = smov 16  }
  0x2c   :  { %73 = vperm.xlu0 %3152, %v3536_v4   ;;  %2858 = vmatprep.subr.bf16.mxu1 %v3433_v1  ;;  %v3199_v32 = vld [vmem:[#allocation5 + $0x30] sm:$0xff]   ;;  %v3200_v33 = vld [vmem:[#allocation5 + $0x38] sm:$0xff]   ;;  %v62_v51 = vld [vmem:[%s4013_s5] sm:$0xff]  ;;  %s3444_s12 = smov 24   ;;  %vm891_vm12 = vcmask 195584   ;;  %vm915_vm13 = vcmask 261120  }
  0x2d   :  { %2839 = vmatpush3.bf16.msra.mxu0 %v3186_v5  ;;  %v219_v54 = vrot.slane %v62_v51, %v3571_v49  ;;  %v225_v60 = vrot.slane %v62_v51, %v3578_v55  ;;  %v3592_v5 = vld [vmem:[%s4015_s7] sm:$0xff] }
  0x2e   :  { %2840 = vmatprep.subr.bf16.mxu0 %v3433_v1 }
  0x2f   :  { %2859 = vmatpush3.bf16.msra.mxu1 %v3194_v27 }
  0x30   :  { %2860 = vmatprep.subr.bf16.mxu1 %v3433_v1 }
  0x31   :  { %2841 = vmatpush3.bf16.msra.mxu0 %v3187_v6  ;;  %v271_v6 = vrot.slane %v3592_v5, %v3571_v49 }
  0x32   :  { %2842 = vmatprep.subr.bf16.mxu0 %v3433_v1 }
  0x33   :  { %2861 = vmatpush3.bf16.msra.mxu1 %v3195_v28 }
  0x34   :  { %2862 = vmatprep.subr.bf16.mxu1 %v3433_v1 }
  0x35   :  { %2843 = vmatpush3.bf16.msra.mxu0 %v3188_v7 }
  0x36   :  { %2844 = vmatprep.subr.bf16.mxu0 %v3433_v1 }
  0x37   :  { %2863 = vmatpush3.bf16.msra.mxu1 %v3196_v29 }
  0x38   :  { %2864 = vmatprep.subr.bf16.mxu1 %v3433_v1 }
  0x39   :  { %2845 = vmatpush3.bf16.msra.mxu0 %v3189_v8 }
  0x3a   :  { %2846 = vmatprep.subr.bf16.mxu0 %v3433_v1 }
  0x3b   :  { %2865 = vmatpush3.bf16.msra.mxu1 %v3197_v30 }
  0x3c   :  { %2866 = vmatprep.subr.bf16.mxu1 %v3433_v1 }
  0x3d   :  { %2847 = vmatpush3.bf16.msra.mxu0 %v3190_v9 }
  0x3e   :  { %2848 = vmatprep.subr.bf16.mxu0 %v3433_v1 }
  0x3f   :  { %2867 = vmatpush3.bf16.msra.mxu1 %v3198_v31  ;;  %v3441_v31 = vmov -1e+09  }
  0x40   :  { %2868 = vmatprep.subr.bf16.mxu1 %v3433_v1 }
  0x41   :  { %2849 = vmatpush3.bf16.msra.mxu0 %v3191_v10 }
  0x42   :  { %2850 = vmatprep.subr.bf16.mxu0 %v3433_v1 }
  0x43   :  { %2869 = vmatpush3.bf16.msra.mxu1 %v3199_v32 }
  0x44   :  { %2870 = vmatprep.subr.bf16.mxu1 %v3433_v1 }
  0x45   :  { %2851 = vmatpush3.bf16.msra.mxu0 %v3192_v11 }
  0x46   :  { %2876 = vmatprep.subr.bf16.mxu0 %v3433_v1 }
  0x47   :  { %2871 = vmatpush3.bf16.msra.mxu1 %v3200_v33 }
  0x48   :  { %2882 = vmatprep.subr.bf16.mxu1 %v3433_v1 }
  0xa7   :  { %v71_v13 = vpop.permute.xlu0 %70 }
  0xa8   :  { %vm75_vm1 = vcmp.eq.s32.totalorder %v3551_v14, %v71_v13 }
  0xab   :  { %v74_v15 = vpop.permute.xlu0 %73 }
  0xac   :  { %vm76_vm2 = vcmp.eq.s32.totalorder %v3551_v14, %v74_v15  ;;  %v3439_v15 = vmov 1  }
  0xad   :  { %vm2620_vm3 = vmpackc.low %vm76_vm2, %vm75_vm1  ;;  %3153 = vset.pattern.permute.xlu1 %v3439_v15 }
  0xae   :  { %2853 = vmatmul.mubr.msk.bf16.vlgmr.msra.gmra.mrb[0].mxu0 %vm2620_vm3, %v3435_v16 }
  0xaf   :  { %2878 = vmatprep.mubr.msk.bf16.mxu0 %vm3434_vm0, %v3433_v1 }
 0x181   :  { %v180_v18 = vpop.f32.mrb[0].mxu0 }
 0x182   :  { %v188_v19 = vadd.f32 %v187_v17, %v180_v18  ;;  %v2854_v20 = vpop.f32.mrb[1].mxu0 }
 0x183   :  { %v183_v21 = vpop.f32.mrb[2].mxu0 }
 0x184   :  { %190 = vadd.xlane.f32.xlu1 %v188_v19  ;;  %v2855_v22 = vpop.f32.mrb[3].mxu0  ;;  %v196_v23 = vmul.f32 %v188_v19, %v188_v19  ;;  %v189_v24 = vadd.f32 %v187_v17, %v183_v21 }
 0x186   :  { %198 = vadd.xlane.f32.xlu0 %v196_v23  ;;  %v197_v25 = vmul.f32 %v189_v24, %v189_v24 }
 0x188   :  { %192 = vadd.xlane.f32.xlu1 %v189_v24 }
 0x18c   :  { %200 = vadd.xlane.f32.xlu1 %v197_v25  ;;  %v65_v25 = vld [vmem:[%s4009_s1] sm:$0x3] }
 0x18d   :  { %vm66_vm5 = vcmp.gt.s32.totalorder %v65_v25, 0  ;;  %v237_v28 = vrot.slane %v65_v25, %v3578_v55 }
 0x18e   :  { %v240_v26 = vsel %vm66_vm5, 1, %v3432_v0 }
 0x18f   :  { %v244_v29 = vrot.slane %v240_v26, %v3571_v49 }
 0x191   :  { %vm245_vm6 = vcmp.eq.s32.totalorder %v244_v29, 1 }
 0x211   :  { %v191_v34 = vpop.xlane.xlu1 %190 }
 0x212   :  { %v194_v35 = vmul.f32 0.03125, %v191_v34 }
 0x213   :  { %v199_v36 = vpop.xlane.xlu0 %198 }
 0x214   :  { %v204_v37 = vmul.f32 %v194_v35, %v194_v35  ;;  %v202_v38 = vmul.f32 0.03125, %v199_v36  ;;  %v208_v52 = vsub.f32 %v188_v19, %v194_v35 }
 0x215   :  { %v193_v39 = vpop.xlane.xlu1 %192 }
 0x216   :  { %v206_v40 = vsub.f32 %v202_v38, %v204_v37  ;;  %v195_v41 = vmul.f32 0.03125, %v193_v39 }
 0x218   :  { %v210_v42 = vadd.f32 1e-12, %v206_v40  ;;  %v205_v44 = vmul.f32 %v195_v41, %v195_v41  ;;  %v209_v56 = vsub.f32 %v189_v24, %v195_v41 }
 0x219   :  { %v201_v43 = vpop.xlane.xlu1 %200 }
 0x21a   :  { %3261 = vrsqrt.f32 %v210_v42  ;;  %v203_v45 = vmul.f32 0.03125, %v201_v43 }
 0x21c   :  { %v207_v46 = vsub.f32 %v203_v45, %v205_v44 }
 0x21e   :  { %v211_v47 = vadd.f32 1e-12, %v207_v46 }
 0x220   :  { %3263 = vrsqrt.f32 %v211_v47 }
 0x224   :  { %v3262_v50 = vpop.eup %3261 }
 0x225   :  { %v214_v53 = vmul.f32 %v3262_v50, %v208_v52 }
 0x227   :  { %v220_v59 = vmul.f32 %v219_v54, %v214_v53 }
 0x229   :  { %v3581_v62 = vadd.f32 %v225_v60, %v220_v59 }
 0x22a   :  { %v3264_v57 = vpop.eup %3263 }
 0x22b   :  { %v215_v58 = vmul.f32 %v3264_v57, %v209_v56 }
 0x22d   :  { %v221_v61 = vmul.f32 %v219_v54, %v215_v58 }
 0x22f   :  { %v3583_v63 = vadd.f32 %v225_v60, %v221_v61 }
 0x231   :  { %v267_v3 = vpack.c.bf16 %v3583_v63, %v3581_v62 }
 0x233   :  { %2873 = vmatmul.mubr.bf16.vlgmr.msra.gmra.mrb[0].mxu1 %v267_v3 }
 0x234   :  { %2884 = vmatprep.mubr.msk.bf16.mxu1 %vm3434_vm0, %v3433_v1 }
 0x306   :  { %v354_v7 = vpop.f32.mrb[0].mxu1 }
 0x307   :  { %v2874_v8 = vpop.f32.mrb[1].mxu1  ;;  %v355_v10 = vadd.f32 %v354_v7, %v271_v6 }
 0x308   :  { %v357_v9 = vpop.f32.mrb[2].mxu1 }
 0x309   :  { %v358_v11 = vadd.f32 %v357_v9, %v271_v6  ;;  %v2875_v12 = vpop.f32.mrb[3].mxu1 }
 0x30b   :  { %v3596_v13 = vpack.c.bf16 %v358_v11, %v355_v10 }
 0x30d   :  { %363 = vrot.lane.b32.xlu1 %v3596_v13, %s3436_s21 }
 0x311   :  { %365 = vrot.lane.b32.xlu1 %v3596_v13, %s3437_s22 }
 0x315   :  { %367 = vrot.lane.b32.xlu1 %v3596_v13, %s3438_s23 }
 0x319   :  { %369 = vrot.lane.b32.xlu1 %v3596_v13, %s3440_s24 }
 0x37f   :  { %v3606_v16 = vpop.permute.xlu1 %363 }
 0x380   :  { %419 = vrot.lane.b32.xlu0 %v3606_v16, %s3440_s24 }
 0x383   :  { %v3610_v17 = vpop.permute.xlu1 %365 }
 0x384   :  { %468 = vrot.lane.b32.xlu1 %v3610_v17, %s3440_s24 }
 0x387   :  { %v3614_v18 = vpop.permute.xlu1 %367 }
 0x388   :  { %517 = vrot.lane.b32.xlu1 %v3614_v18, %s3440_s24 }
 0x38b   :  { %v370_v19 = vpop.permute.xlu1 %369 }
 0x38c   :  { %v376_v20 = vsel %vm371_vm4, %v370_v19, 0  ;;  %229 = vperm.xlu1 %3153, %v3530_v2  }
 0x38d   :  { %2877 = vmatpush3.bf16.xpose.msra.mxu0 %v376_v20 }
 0x38e   :  { %2888 = vmatprep.subr.bf16.mxu0 %v3433_v1 }
 0x390   :  { %232 = vperm.xlu1 %3153, %v3536_v4  }
 0x394   :  { %2879 = vmatmul.mubr.msk.bf16.vlgmr.msra.gmra.mrb[4].mxu0 %vm371_vm4, %v3596_v13  ;;  %3184 = vset.pattern.permute.xlu1 %v3432_v0 }
 0x395   :  { %2890 = vmatprep.mubr.msk.bf16.mxu0 %vm3434_vm0, %v3433_v1 }
 0x3f2   :  { %v420_v21 = vpop.permute.xlu0 %419 }
 0x3f3   :  { %v425_v22 = vsel %vm371_vm4, %v420_v21, 0 }
 0x3f4   :  { %2883 = vmatpush3.bf16.xpose.msra.mxu1 %v425_v22 }
 0x3f5   :  { %2894 = vmatprep.subr.bf16.mxu1 %v3433_v1 }
 0x3f6   :  { %v469_v2 = vpop.permute.xlu1 %468 }
 0x3f7   :  { %v474_v23 = vsel %vm371_vm4, %v469_v2, 0 }
 0x3f8   :  { %2889 = vmatpush3.bf16.xpose.msra.mxu0 %v474_v23 }
 0x3f9   :  { %2900 = vmatprep.subr.bf16.mxu0 %v3433_v1 }
 0x3fa   :  { %v518_v4 = vpop.permute.xlu1 %517 }
 0x3fb   :  { %v523_v24 = vsel %vm371_vm4, %v518_v4, 0  ;;  %2885 = vmatmul.mubr.msk.bf16.vlgmr.msra.gmra.mrb[4].mxu1 %vm371_vm4, %v3606_v16 }
 0x3fc   :  { %2895 = vmatpush3.bf16.xpose.msra.mxu1 %v523_v24  ;;  %2896 = vmatprep.mubr.msk.bf16.mxu1 %vm3434_vm0, %v3433_v1 }
 0x3fd   :  { %2906 = vmatprep.subr.bf16.mxu1 %v3433_v1 }
 0x3ff   :  { %2891 = vmatmul.mubr.msk.bf16.vlgmr.msra.gmra.mrb[8].mxu0 %vm371_vm4, %v3610_v17 }
 0x400   :  { %2902 = vmatprep.mubr.msk.bf16.mxu0 %vm3434_vm0, %v3433_v1 }
 0x403   :  { %2897 = vmatmul.mubr.msk.bf16.vlgmr.msra.gmra.mrb[8].mxu1 %vm371_vm4, %v3614_v18 }
 0x404   :  { %2908 = vmatprep.mubr.msk.bf16.mxu1 %vm3434_vm0, %v3433_v1 }
 0x40b   :  { %v230_v27 = vpop.permute.xlu1 %229 }
 0x40c   :  { %vm238_vm7 = vcmp.eq.s32.totalorder %v230_v27, %v237_v28 }
 0x40d   :  { %vm246_vm9 = vmand %vm238_vm7, %vm245_vm6 }
 0x40e   :  { %v3651_v32 = vsel %vm246_vm9, 0.0, %v3441_v31 }
 0x40f   :  { %v233_v30 = vpop.permute.xlu1 %232 }
 0x410   :  { %vm239_vm8 = vcmp.eq.s32.totalorder %v233_v30, %v237_v28 }
 0x411   :  { %vm247_vm10 = vmand %vm239_vm8, %vm245_vm6 }
 0x412   :  { %v3653_v36 = vsel %vm247_vm10, 0.0, %v3441_v31 }
 0x467   :  { %v412_v33 = vpop.f32.mrb[4].mxu0 }
 0x468   :  { %v566_v34 = vmul.f32 0.35355338, %v412_v33  ;;  %v2880_v35 = vpop.f32.mrb[5].mxu0 }
 0x469   :  { %v415_v0 = vpop.f32.mrb[6].mxu0 }
 0x46a   :  { %v567_v37 = vmul.f32 0.35355338, %v415_v0  ;;  %v2881_v38 = vpop.f32.mrb[7].mxu0  ;;  %v574_v39 = vadd.f32 %v566_v34, %v3651_v32 }
 0x46c   :  { %v583_v40 = vsel %vm582_vm11, %v574_v39, -inf  ;;  %v575_v41 = vadd.f32 %v567_v37, %v3653_v36 }
 0x46d   :  { %584 = vmax.xlane.f32.xlu1 %v583_v40 }
 0x46e   :  { %v586_v42 = vsel %vm582_vm11, %v575_v41, -inf }
 0x46f   :  { %587 = vmax.xlane.f32.xlu0 %v586_v42 }
 0x4ce   :  { %v461_v43 = vpop.f32.mrb[4].mxu1 }
 0x4cf   :  { %v568_v44 = vmul.f32 0.35355338, %v461_v43  ;;  %v2886_v45 = vpop.f32.mrb[5].mxu1 }
 0x4d0   :  { %v464_v46 = vpop.f32.mrb[6].mxu1 }
 0x4d1   :  { %v569_v47 = vmul.f32 0.35355338, %v464_v46  ;;  %v2887_v50 = vpop.f32.mrb[7].mxu1  ;;  %v576_v51 = vadd.f32 %v568_v44, %v3651_v32 }
 0x4d2   :  { %v510_v52 = vpop.f32.mrb[8].mxu0 }
 0x4d3   :  { %v570_v53 = vmul.f32 0.35355338, %v510_v52  ;;  %v2892_v54 = vpop.f32.mrb[9].mxu0  ;;  %v589_v56 = vsel %vm582_vm11, %v576_v51, -inf  ;;  %v577_v57 = vadd.f32 %v569_v47, %v3653_v36 }
 0x4d4   :  { %v513_v58 = vpop.f32.mrb[10].mxu0  ;;  %590 = vmax.xlane.f32.xlu0 %v589_v56 }
 0x4d5   :  { %v571_v59 = vmul.f32 0.35355338, %v513_v58  ;;  %v2893_v60 = vpop.f32.mrb[11].mxu0  ;;  %v592_v61 = vsel %vm582_vm11, %v577_v57, -inf  ;;  %v578_v3 = vadd.f32 %v570_v53, %v3651_v32 }
 0x4d6   :  { %593 = vmax.xlane.f32.xlu1 %v592_v61  ;;  %v559_v6 = vpop.f32.mrb[8].mxu1 }
 0x4d7   :  { %v572_v7 = vmul.f32 0.35355338, %v559_v6  ;;  %v2898_v8 = vpop.f32.mrb[9].mxu1  ;;  %v595_v9 = vsel %vm582_vm11, %v578_v3, -inf  ;;  %v579_v10 = vadd.f32 %v571_v59, %v3653_v36 }
 0x4d8   :  { %596 = vmax.xlane.f32.xlu0 %v595_v9  ;;  %v562_v11 = vpop.f32.mrb[10].mxu1 }
 0x4d9   :  { %v573_v12 = vmul.f32 0.35355338, %v562_v11  ;;  %v2899_v15 = vpop.f32.mrb[11].mxu1  ;;  %v598_v19 = vsel %vm582_vm11, %v579_v10, -inf  ;;  %v580_v20 = vadd.f32 %v572_v7, %v3651_v32 }
 0x4da   :  { %599 = vmax.xlane.f32.xlu1 %v598_v19 }
 0x4db   :  { %v601_v21 = vsel %vm582_vm11, %v580_v20, -inf  ;;  %v581_v22 = vadd.f32 %v573_v12, %v3653_v36 }
 0x4dc   :  { %602 = vmax.xlane.f32.xlu0 %v601_v21 }
 0x4dd   :  { %v604_v2 = vsel %vm582_vm11, %v581_v22, -inf }
 0x4de   :  { %605 = vmax.xlane.f32.xlu1 %v604_v2 }
 0x4ef   :  { %722 = vrot.lane.b32.xlu1 %v3606_v16, %s3429_s19 }
 0x4f2   :  { %675 = vrot.lane.b32.xlu0 %v3596_v13, %s3429_s19 }
 0x4fa   :  { %v585_v23 = vpop.xlane.xlu1 %584 }
 0x4fb   :  { %v607_v4 = vsub.f32 %v574_v39, %v585_v23 }
 0x4fc   :  { %v588_v24 = vpop.xlane.xlu0 %587 }
 0x4fd   :  { %v608_v25 = vsub.f32 %v575_v41, %v588_v24  ;;  %v615_v26 = vmul.f32 1.442695, %v607_v4 }
 0x4ff   :  { %v617_v27 = vmul.f32 1.442695, %v608_v25  ;;  %3265 = vpow2.f32 %v615_v26 }
 0x501   :  { %3267 = vpow2.f32 %v617_v27 }
 0x509   :  { %v3266_v28 = vpop.eup %3265 }
 0x50a   :  { %v631_v30 = vsel %vm582_vm11, %v3266_v28, 0.0 }
 0x50b   :  { %v3268_v29 = vpop.eup %3267 }
 0x50c   :  { %v634_v31 = vsel %vm582_vm11, %v3268_v29, 0.0 }
 0x511   :  { %632 = vadd.xlane.f32.xlu0 %v631_v30 }
 0x513   :  { %635 = vadd.xlane.f32.xlu1 %v634_v31 }
 0x561   :  { %v591_v16 = vpop.xlane.xlu0 %590 }
 0x562   :  { %v609_v33 = vsub.f32 %v576_v51, %v591_v16 }
 0x563   :  { %v594_v34 = vpop.xlane.xlu1 %593 }
 0x564   :  { %v619_v13 = vmul.f32 1.442695, %v609_v33  ;;  %v610_v35 = vsub.f32 %v577_v57, %v594_v34 }
 0x565   :  { %v597_v0 = vpop.xlane.xlu0 %596 }
 0x566   :  { %3269 = vpow2.f32 %v619_v13  ;;  %v621_v37 = vmul.f32 1.442695, %v610_v35  ;;  %v611_v38 = vsub.f32 %v578_v3, %v597_v0 }
 0x567   :  { %v600_v39 = vpop.xlane.xlu1 %599 }
 0x568   :  { %3271 = vpow2.f32 %v621_v37  ;;  %v623_v40 = vmul.f32 1.442695, %v611_v38  ;;  %v612_v41 = vsub.f32 %v579_v10, %v600_v39 }
 0x569   :  { %v603_v42 = vpop.xlane.xlu0 %602 }
 0x56a   :  { %3273 = vpow2.f32 %v623_v40  ;;  %v625_v43 = vmul.f32 1.442695, %v612_v41  ;;  %v613_v44 = vsub.f32 %v580_v20, %v603_v42 }
 0x56b   :  { %v606_v45 = vpop.xlane.xlu1 %605 }
 0x56c   :  { %3275 = vpow2.f32 %v625_v43  ;;  %v627_v46 = vmul.f32 1.442695, %v613_v44  ;;  %v614_v47 = vsub.f32 %v581_v22, %v606_v45  ;;  %v3201_v43 = vld [vmem:[%s4016_s8] sm:$0xff]  }
 0x56d   :  { %v676_v50 = vpop.permute.xlu0 %675 }
 0x56e   :  { %3277 = vpow2.f32 %v627_v46  ;;  %v629_v51 = vmul.f32 1.442695, %v614_v47  ;;  %2901 = vmatpush3.bf16.msra.mxu0 %v676_v50  ;;  %v3202_v46 = vld [vmem:[%s4016_s8 + $0x8] sm:$0xff]  }
 0x56f   :  { %v723_v52 = vpop.permute.xlu1 %722  ;;  %2912 = vmatprep.subr.bf16.mxu0 %v3433_v1 }
 0x570   :  { %v3270_v53 = vpop.eup %3269  ;;  %3279 = vpow2.f32 %v629_v51  ;;  %2907 = vmatpush3.bf16.msra.mxu1 %v723_v52 }
 0x571   :  { %v637_v54 = vsel %vm582_vm11, %v3270_v53, 0.0  ;;  %2918 = vmatprep.subr.bf16.mxu1 %v3433_v1 }
 0x572   :  { %v3272_v56 = vpop.eup %3271  ;;  %638 = vadd.xlane.f32.xlu0 %v637_v54 }
 0x573   :  { %v640_v57 = vsel %vm582_vm11, %v3272_v56, 0.0 }
 0x574   :  { %v3274_v58 = vpop.eup %3273  ;;  %641 = vadd.xlane.f32.xlu1 %v640_v57 }
 0x575   :  { %v643_v59 = vsel %vm582_vm11, %v3274_v58, 0.0 }
 0x576   :  { %v3276_v60 = vpop.eup %3275  ;;  %644 = vadd.xlane.f32.xlu0 %v643_v59 }
 0x577   :  { %v646_v61 = vsel %vm582_vm11, %v3276_v60, 0.0 }
 0x578   :  { %v3278_v3 = vpop.eup %3277  ;;  %647 = vadd.xlane.f32.xlu1 %v646_v61 }
 0x579   :  { %v649_v6 = vsel %vm582_vm11, %v3278_v3, 0.0 }
 0x57a   :  { %v3280_v7 = vpop.eup %3279  ;;  %650 = vadd.xlane.f32.xlu0 %v649_v6 }
 0x57b   :  { %v652_v8 = vsel %vm582_vm11, %v3280_v7, 0.0 }
 0x57c   :  { %653 = vadd.xlane.f32.xlu1 %v652_v8 }
 0x58d   :  { %769 = vrot.lane.b32.xlu1 %v3610_v17, %s3429_s19 }
 0x590   :  { %816 = vrot.lane.b32.xlu0 %v3614_v18, %s3429_s19 }
 0x59e   :  { %v633_v9 = vpop.xlane.xlu0 %632 }
 0x59f   :  { %3281 = vrcp.f32 %v633_v9 }
 0x5a0   :  { %v636_v10 = vpop.xlane.xlu1 %635 }
 0x5a1   :  { %3283 = vrcp.f32 %v636_v10 }
 0x5a9   :  { %v3282_v11 = vpop.eup %3281 }
 0x5aa   :  { %v663_v15 = vmul.f32 %v3282_v11, %v3266_v28 }
 0x5ab   :  { %v3284_v12 = vpop.eup %3283 }
 0x5ac   :  { %v664_v19 = vmul.f32 %v3284_v12, %v3268_v29 }
 0x5ae   :  { %v671_v20 = vpack.c.bf16 %v664_v19, %v663_v15 }
 0x5b0   :  { %2903 = vmatmul.mubr.msk.bf16.vlgmr.msra.gmra.mrb[12].mxu0 %vm582_vm11, %v671_v20 }
 0x5b1   :  { %2914 = vmatprep.mubr.msk.bf16.mxu0 %vm3434_vm0, %v3433_v1 }
 0x5ff   :  { %v639_v21 = vpop.xlane.xlu0 %638 }
 0x600   :  { %3285 = vrcp.f32 %v639_v21 }
 0x601   :  { %v642_v17 = vpop.xlane.xlu1 %641 }
 0x602   :  { %3287 = vrcp.f32 %v642_v17 }
 0x603   :  { %v645_v22 = vpop.xlane.xlu0 %644 }
 0x604   :  { %3289 = vrcp.f32 %v645_v22 }
 0x605   :  { %v648_v18 = vpop.xlane.xlu1 %647 }
 0x606   :  { %3291 = vrcp.f32 %v648_v18 }
 0x607   :  { %v651_v2 = vpop.xlane.xlu0 %650 }
 0x608   :  { %3293 = vrcp.f32 %v651_v2 }
 0x609   :  { %v654_v23 = vpop.xlane.xlu1 %653 }
 0x60a   :  { %v3286_v4 = vpop.eup %3285  ;;  %3295 = vrcp.f32 %v654_v23 }
 0x60b   :  { %v665_v25 = vmul.f32 %v3286_v4, %v3270_v53  ;;  %v817_v33 = vpop.permute.xlu0 %816  ;;  %v902_v4 = vrot.slane %v3592_v5, %v3578_v55 }
 0x60c   :  { %v3288_v24 = vpop.eup %3287 }
 0x60d   :  { %v666_v26 = vmul.f32 %v3288_v24, %v3272_v56  ;;  %v770_v27 = vpop.permute.xlu1 %769 }
 0x60e   :  { %v3290_v28 = vpop.eup %3289  ;;  %2913 = vmatpush3.bf16.msra.mxu0 %v770_v27 }
 0x60f   :  { %v672_v29 = vpack.c.bf16 %v666_v26, %v665_v25  ;;  %2924 = vmatprep.subr.bf16.mxu0 %v3433_v1  ;;  %v667_v31 = vmul.f32 %v3290_v28, %v3274_v58 }
 0x610   :  { %v3292_v30 = vpop.eup %3291 }
 0x611   :  { %v668_v16 = vmul.f32 %v3292_v30, %v3276_v60  ;;  %2909 = vmatmul.mubr.msk.bf16.vlgmr.msra.gmra.mrb[12].mxu1 %vm582_vm11, %v672_v29 }
 0x612   :  { %v3294_v34 = vpop.eup %3293  ;;  %2919 = vmatpush3.bf16.msra.mxu1 %v817_v33  ;;  %2920 = vmatprep.mubr.msk.bf16.mxu1 %vm3434_vm0, %v3433_v1 }
 0x613   :  { %v673_v13 = vpack.c.bf16 %v668_v16, %v667_v31  ;;  %2932 = vmatprep.subr.bf16.mxu1 %v3433_v1  ;;  %v669_v0 = vmul.f32 %v3294_v34, %v3278_v3  ;;  %v3203_v34 = vld [vmem:[#allocation5 + $0x40] sm:$0xff]  }
 0x614   :  { %v3296_v35 = vpop.eup %3295 }
 0x615   :  { %v670_v37 = vmul.f32 %v3296_v35, %v3280_v7  ;;  %2915 = vmatmul.mubr.msk.bf16.vlgmr.msra.gmra.mrb[16].mxu0 %vm582_vm11, %v673_v13  ;;  %v3204_v13 = vld [vmem:[#allocation5 + $0x48] sm:$0xff]   ;;  %v3205_v35 = vld [vmem:[#allocation5 + $0x50] sm:$0xff]  }
 0x616   :  { %2928 = vmatprep.mubr.msk.bf16.mxu0 %vm3434_vm0, %v3433_v1  ;;  %2925 = vmatpush3.bf16.msra.mxu0 %v3201_v43 }
 0x617   :  { %v674_v38 = vpack.c.bf16 %v670_v37, %v669_v0  ;;  %2926 = vmatprep.subr.bf16.mxu0 %v3433_v1  ;;  %v3208_v0 = vld [vmem:[#allocation5 + $0x68] sm:$0xff]   ;;  %v3209_v37 = vld [vmem:[#allocation5 + $0x70] sm:$0xff]  }
 0x619   :  { %2921 = vmatmul.mubr.msk.bf16.vlgmr.msra.gmra.mrb[16].mxu1 %vm582_vm11, %v674_v38  ;;  %v3210_v38 = vld [vmem:[#allocation5 + $0x78] sm:$0xff]  }
 0x61a   :  { %2948 = vmatprep.mubr.msk.bf16.mxu1 %vm3434_vm0, %v3433_v1  ;;  %2927 = vmatpush3.bf16.msra.mxu0 %v3202_v46 }
 0x61b   :  { %2952 = vmatprep.subr.bf16.mxu0 %v3433_v1  ;;  %2933 = vmatpush3.bf16.msra.mxu1 %v3203_v34 }
 0x61c   :  { %2934 = vmatprep.subr.bf16.mxu1 %v3433_v1 }
 0x61f   :  { %2935 = vmatpush3.bf16.msra.mxu1 %v3204_v13 }
 0x620   :  { %2936 = vmatprep.subr.bf16.mxu1 %v3433_v1 }
 0x623   :  { %2937 = vmatpush3.bf16.msra.mxu1 %v3205_v35 }
 0x624   :  { %2938 = vmatprep.subr.bf16.mxu1 %v3433_v1 }
 0x683   :  { %v715_v39 = vpop.f32.mrb[12].mxu0 }
 0x684   :  { %v2904_v40 = vpop.f32.mrb[13].mxu0 }
 0x685   :  { %v718_v41 = vpop.f32.mrb[14].mxu0 }
 0x686   :  { %v2905_v42 = vpop.f32.mrb[15].mxu0 }
 0x6e4   :  { %v762_v44 = vpop.f32.mrb[12].mxu1 }
 0x6e5   :  { %v2910_v45 = vpop.f32.mrb[13].mxu1 }
 0x6e6   :  { %v765_v47 = vpop.f32.mrb[14].mxu1 }
 0x6e7   :  { %v3154_v50 = vpack.i.bf16 %v765_v47, %v762_v44  ;;  %v2911_v51 = vpop.f32.mrb[15].mxu1 }
 0x6e8   :  { %v809_v52 = vpop.f32.mrb[16].mxu0 }
 0x6e9   :  { %v2916_v53 = vpop.f32.mrb[17].mxu0  ;;  %3155 = vrot.lane.b32.xlu1 %v3154_v50, %s3442_s30 }
 0x6ea   :  { %v812_v54 = vpop.f32.mrb[18].mxu0 }
 0x6eb   :  { %v3159_v56 = vpack.i.bf16 %v812_v54, %v809_v52  ;;  %v2917_v57 = vpop.f32.mrb[19].mxu0 }
 0x6ec   :  { %v856_v58 = vpop.f32.mrb[16].mxu1 }
 0x6ed   :  { %3160 = vrot.lane.b32.xlu0 %v3159_v56, %s3443_s11  ;;  %v2922_v59 = vpop.f32.mrb[17].mxu1  ;;  %v3736_v56 = vsub.s32 2, %v3568_v48 }
 0x6ee   :  { %v859_v60 = vpop.f32.mrb[18].mxu1 }
 0x6ef   :  { %v3164_v61 = vpack.i.bf16 %v859_v60, %v856_v58  ;;  %v2923_v3 = vpop.f32.mrb[19].mxu1  ;;  %v991_v60 = vrot.slane %v3592_v5, %v3736_v56 }
 0x6f1   :  { %3165 = vrot.lane.b32.xlu1 %v3164_v61, %s3444_s12  ;;  %v3741_v61 = vsub.s32 3, %v3568_v48 }
 0x75b   :  { %v3156_v6 = vpop.permute.xlu1 %3155 }
 0x75c   :  { %v3158_v8 = vunpack.i.h.bf16 %v3156_v6  ;;  %v3157_v9 = vunpack.i.l.bf16 %v3156_v6 }
 0x75e   :  { %v888_v15 = vsel %vm371_vm4, %v718_v41, %v3158_v8  ;;  %v887_v19 = vsel %vm371_vm4, %v715_v39, %v3157_v9  ;;  %v997_v9 = vrot.slane %v3592_v5, %v3741_v61 }
 0x75f   :  { %v3161_v7 = vpop.permute.xlu0 %3160 }
 0x760   :  { %v3163_v10 = vunpack.i.h.bf16 %v3161_v7  ;;  %v3162_v11 = vunpack.i.l.bf16 %v3161_v7 }
 0x762   :  { %v889_v17 = vsel %vm582_vm11, %v887_v19, %v3162_v11  ;;  %v890_v22 = vsel %vm582_vm11, %v888_v15, %v3163_v10  ;;  %v3211_v19 = vld [vmem:[#allocation5 + $0x80] sm:$0xff]  }
 0x763   :  { %v3166_v12 = vpop.permute.xlu1 %3165 }
 0x764   :  { %v3168_v20 = vunpack.i.h.bf16 %v3166_v12  ;;  %v3167_v21 = vunpack.i.l.bf16 %v3166_v12 }
 0x766   :  { %v893_v18 = vsel %vm891_vm12, %v890_v22, %v3168_v20  ;;  %v892_v2 = vsel %vm891_vm12, %v889_v17, %v3167_v21  ;;  %v3212_v20 = vld [vmem:[#allocation5 + $0x88] sm:$0xff]   ;;  %v3213_v21 = vld [vmem:[#allocation5 + $0x90] sm:$0xff]   ;;  %v3214_v17 = vld [vmem:[#allocation5 + $0x98] sm:$0xff]  }
 0x767   :  { %v898_v23 = vpack.c.bf16 %v893_v18, %v892_v2  ;;  %v3215_v22 = vld [vmem:[#allocation5 + $0xa0] sm:$0xff]   ;;  %v3216_v18 = vld [vmem:[#allocation5 + $0xa8] sm:$0xff]   ;;  %v3217_v2 = vld [vmem:[#allocation5 + $0xb0] sm:$0xff]  }
 0x769   :  { %2929 = vmatmul.mubr.msk.bf16.vlgmr.msra.gmra.mrb[20].mxu0 %vm915_vm13, %v898_v23  ;;  %v3218_v23 = vld [vmem:[#allocation5 + $0xb8] sm:$0xff]  }
 0x76a   :  { %2968 = vmatprep.mubr.msk.bf16.mxu0 %vm3434_vm0, %v3433_v1  ;;  %2953 = vmatpush3.bf16.msra.mxu0 %v3211_v19  ;;  %v3226_v19 = vld [vmem:[#allocation5 + $0xf8] sm:$0xff]  }
 0x76b   :  { %2954 = vmatprep.subr.bf16.mxu0 %v3433_v1 }
 0x76e   :  { %2955 = vmatpush3.bf16.msra.mxu0 %v3212_v20 }
 0x76f   :  { %2956 = vmatprep.subr.bf16.mxu0 %v3433_v1 }
 0x772   :  { %2957 = vmatpush3.bf16.msra.mxu0 %v3213_v21 }
 0x773   :  { %2958 = vmatprep.subr.bf16.mxu0 %v3433_v1 }
 0x776   :  { %2959 = vmatpush3.bf16.msra.mxu0 %v3214_v17 }
 0x777   :  { %2960 = vmatprep.subr.bf16.mxu0 %v3433_v1 }
 0x77a   :  { %2961 = vmatpush3.bf16.msra.mxu0 %v3215_v22 }
 0x77b   :  { %2962 = vmatprep.subr.bf16.mxu0 %v3433_v1 }
 0x77e   :  { %2963 = vmatpush3.bf16.msra.mxu0 %v3216_v18 }
 0x77f   :  { %2964 = vmatprep.subr.bf16.mxu0 %v3433_v1 }
 0x782   :  { %2965 = vmatpush3.bf16.msra.mxu0 %v3217_v2 }
 0x783   :  { %2966 = vmatprep.subr.bf16.mxu0 %v3433_v1 }
 0x786   :  { %2967 = vmatpush3.bf16.msra.mxu0 %v3218_v23 }
 0x787   :  { %2992 = vmatprep.subr.bf16.mxu0 %v3433_v1 }
 0x83c   :  { %v953_v24 = vpop.f32.mrb[20].mxu0 }
 0x83d   :  { %v954_v25 = vadd.f32 %v953_v24, %v902_v4  ;;  %v2930_v26 = vpop.f32.mrb[21].mxu0 }
 0x83e   :  { %v956_v27 = vpop.f32.mrb[22].mxu0 }
 0x83f   :  { %v960_v28 = vadd.f32 %v954_v25, %v3581_v62  ;;  %v957_v29 = vadd.f32 %v956_v27, %v902_v4  ;;  %v2931_v30 = vpop.f32.mrb[23].mxu0  ;;  %v3206_v62 = vld [vmem:[#allocation5 + $0x58] sm:$0xff]   ;;  %v3762_v4 = vsub.s32 4, %v3568_v48 }
 0x840   :  { %2939 = vmatpush3.bf16.msra.mxu1 %v3206_v62 }
 0x841   :  { %v961_v31 = vadd.f32 %v957_v29, %v3583_v63  ;;  %962 = vadd.xlane.f32.xlu0 %v960_v28  ;;  %v968_v16 = vmul.f32 %v960_v28, %v960_v28  ;;  %v3207_v63 = vld [vmem:[#allocation5 + $0x60] sm:$0xff]   ;;  %2940 = vmatprep.subr.bf16.mxu1 %v3433_v1  ;;  %v1021_v24 = vrot.slane %v3592_v5, %v3762_v4 }
 0x843   :  { %964 = vadd.xlane.f32.xlu1 %v961_v31  ;;  %v969_v33 = vmul.f32 %v961_v31, %v961_v31 }
 0x844   :  { %2941 = vmatpush3.bf16.msra.mxu1 %v3207_v63 }
 0x845   :  { %970 = vadd.xlane.f32.xlu0 %v968_v16  ;;  %2942 = vmatprep.subr.bf16.mxu1 %v3433_v1 }
 0x848   :  { %2943 = vmatpush3.bf16.msra.mxu1 %v3208_v0 }
 0x849   :  { %972 = vadd.xlane.f32.xlu0 %v969_v33  ;;  %2944 = vmatprep.subr.bf16.mxu1 %v3433_v1 }
 0x84c   :  { %2945 = vmatpush3.bf16.msra.mxu1 %v3209_v37 }
 0x84d   :  { %2946 = vmatprep.subr.bf16.mxu1 %v3433_v1 }
 0x850   :  { %2947 = vmatpush3.bf16.msra.mxu1 %v3210_v38 }
 0x851   :  { %2972 = vmatprep.subr.bf16.mxu1 %v3433_v1 }
 0x8ce   :  { %v963_v39 = vpop.xlane.xlu0 %962 }
 0x8cf   :  { %v966_v40 = vmul.f32 0.03125, %v963_v39 }
 0x8d0   :  { %v965_v41 = vpop.xlane.xlu1 %964 }
 0x8d1   :  { %v976_v43 = vmul.f32 %v966_v40, %v966_v40  ;;  %v967_v44 = vmul.f32 0.03125, %v965_v41  ;;  %v980_v57 = vsub.f32 %v960_v28, %v966_v40 }
 0x8d2   :  { %v971_v42 = vpop.xlane.xlu0 %970 }
 0x8d3   :  { %v974_v45 = vmul.f32 0.03125, %v971_v42  ;;  %v977_v50 = vmul.f32 %v967_v44, %v967_v44  ;;  %v981_v3 = vsub.f32 %v961_v31, %v967_v44 }
 0x8d5   :  { %v978_v46 = vsub.f32 %v974_v45, %v976_v43 }
 0x8d6   :  { %v973_v47 = vpop.xlane.xlu0 %972 }
 0x8d7   :  { %v982_v51 = vadd.f32 1e-12, %v978_v46  ;;  %v975_v52 = vmul.f32 0.03125, %v973_v47  ;;  %v1149_v47 = vsub.s32 5, %v3568_v48 }
 0x8d9   :  { %3297 = vrsqrt.f32 %v982_v51  ;;  %v979_v53 = vsub.f32 %v975_v52, %v977_v50  ;;  %v1150_v50 = vrot.slane %v3592_v5, %v1149_v47 }
 0x8db   :  { %v983_v54 = vadd.f32 1e-12, %v979_v53 }
 0x8dd   :  { %3299 = vrsqrt.f32 %v983_v54 }
 0x8e3   :  { %v3298_v58 = vpop.eup %3297 }
 0x8e4   :  { %v986_v59 = vmul.f32 %v3298_v58, %v980_v57 }
 0x8e6   :  { %v992_v8 = vmul.f32 %v991_v60, %v986_v59 }
 0x8e7   :  { %v3300_v6 = vpop.eup %3299 }
 0x8e8   :  { %v987_v7 = vmul.f32 %v3300_v6, %v981_v3  ;;  %v3745_v11 = vadd.f32 %v997_v9, %v992_v8  ;;  %v3220_v8 = vld [vmem:[#allocation5 + $0xc8] sm:$0xff]  }
 0x8ea   :  { %v993_v10 = vmul.f32 %v991_v60, %v987_v7  ;;  %v3219_v7 = vld [vmem:[#allocation5 + $0xc0] sm:$0xff]  }
 0x8ec   :  { %v3747_v12 = vadd.f32 %v997_v9, %v993_v10  ;;  %v3221_v9 = vld [vmem:[#allocation5 + $0xd0] sm:$0xff]   ;;  %v3222_v10 = vld [vmem:[#allocation5 + $0xd8] sm:$0xff]  }
 0x8ee   :  { %v1017_v15 = vpack.c.bf16 %v3747_v12, %v3745_v11 }
 0x8f0   :  { %2949 = vmatmul.mubr.bf16.vlgmr.msra.gmra.mrb[20].mxu1 %v1017_v15  ;;  %v3225_v15 = vld [vmem:[#allocation5 + $0xf0] sm:$0xff]  }
 0x8f1   :  { %2988 = vmatprep.mubr.msk.bf16.mxu1 %vm3434_vm0, %v3433_v1  ;;  %2973 = vmatpush3.bf16.msra.mxu1 %v3219_v7 }
 0x8f2   :  { %2974 = vmatprep.subr.bf16.mxu1 %v3433_v1 }
 0x8f5   :  { %2975 = vmatpush3.bf16.msra.mxu1 %v3220_v8 }
 0x8f6   :  { %2976 = vmatprep.subr.bf16.mxu1 %v3433_v1 }
 0x8f9   :  { %2977 = vmatpush3.bf16.msra.mxu1 %v3221_v9 }
 0x8fa   :  { %2978 = vmatprep.subr.bf16.mxu1 %v3433_v1 }
 0x8fd   :  { %2979 = vmatpush3.bf16.msra.mxu1 %v3222_v10 }
 0x8fe   :  { %2980 = vmatprep.subr.bf16.mxu1 %v3433_v1 }
 0x9c3   :  { %v1104_v25 = vpop.f32.mrb[20].mxu1 }
 0x9c4   :  { %v1105_v26 = vadd.f32 %v1104_v25, %v1021_v24  ;;  %v2950_v27 = vpop.f32.mrb[21].mxu1 }
 0x9c5   :  { %v1107_v28 = vpop.f32.mrb[22].mxu1 }
 0x9c6   :  { %v1111_v29 = vmul.f32 %v1105_v26, %v1105_v26  ;;  %v1108_v30 = vadd.f32 %v1107_v28, %v1021_v24  ;;  %v2951_v31 = vpop.f32.mrb[23].mxu1 }
 0x9c7   :  { %v1270_v31 = vsub.s32 6, %v3568_v48 }
 0x9c8   :  { %v1113_v16 = vmul.f32 %v1111_v29, %v1105_v26  ;;  %v1112_v33 = vmul.f32 %v1108_v30, %v1108_v30 }
 0x9ca   :  { %v1115_v34 = vmul.f32 0.044715, %v1113_v16  ;;  %v1114_v13 = vmul.f32 %v1112_v33, %v1108_v30  ;;  %v1271_v33 = vrot.slane %v3592_v5, %v1270_v31 }
 0x9cc   :  { %v1117_v35 = vadd.f32 %v1115_v34, %v1105_v26  ;;  %v1116_v62 = vmul.f32 0.044715, %v1114_v13  ;;  %v1276_v34 = vsub.s32 7, %v3568_v48 }
 0x9ce   :  { %v1119_v63 = vmul.f32 0.7978846, %v1117_v35  ;;  %v1118_v0 = vadd.f32 %v1116_v62, %v1108_v30 }
 0x9d0   :  { %3301 = vtanh.f32 %v1119_v63  ;;  %v1120_v37 = vmul.f32 0.7978846, %v1118_v0 }
 0x9d2   :  { %3303 = vtanh.f32 %v1120_v37 }
 0x9da   :  { %v3302_v38 = vpop.eup %3301 }
 0x9db   :  { %v1123_v39 = vadd.f32 1.0, %v3302_v38  ;;  %v1277_v38 = vrot.slane %v3592_v5, %v1276_v34 }
 0x9dc   :  { %v3304_v40 = vpop.eup %3303 }
 0x9dd   :  { %v1125_v41 = vmul.f32 0.5, %v1123_v39  ;;  %v1124_v42 = vadd.f32 1.0, %v3304_v40 }
 0x9df   :  { %v1126_v43 = vmul.f32 0.5, %v1124_v42  ;;  %v1127_v44 = vmul.f32 %v1125_v41, %v1105_v26 }
 0x9e1   :  { %v1128_v45 = vmul.f32 %v1126_v43, %v1108_v30  ;;  %v3801_v43 = vld [vmem:[%s4015_s7 + $0x8] sm:$0xff] }
 0x9e2   :  { %v1303_v5 = vrot.slane %v3801_v43, %v3571_v49 }
 0x9e3   :  { %v1146_v46 = vpack.c.bf16 %v1128_v45, %v1127_v44 }
 0x9e5   :  { %2969 = vmatmul.mubr.bf16.vlgmr.msra.gmra.mrb[24].mxu0 %v1146_v46 }
 0x9e6   :  { %2994 = vmatprep.mubr.msk.bf16.mxu0 %vm3434_vm0, %v3433_v1 }
 0xab8   :  { %v1233_v51 = vpop.f32.mrb[24].mxu0 }
 0xab9   :  { %v1234_v52 = vadd.f32 %v1233_v51, %v1150_v50  ;;  %v2970_v53 = vpop.f32.mrb[25].mxu0 }
 0xaba   :  { %v1236_v54 = vpop.f32.mrb[26].mxu0 }
 0xabb   :  { %v1240_v57 = vadd.f32 %v1234_v52, %v3745_v11  ;;  %v1237_v58 = vadd.f32 %v1236_v54, %v1150_v50  ;;  %v2971_v59 = vpop.f32.mrb[27].mxu0  ;;  %v3223_v11 = vld [vmem:[#allocation5 + $0xe0] sm:$0xff]  }
 0xabc   :  { %2981 = vmatpush3.bf16.msra.mxu1 %v3223_v11 }
 0xabd   :  { %v1241_v60 = vadd.f32 %v1237_v58, %v3747_v12  ;;  %1242 = vadd.xlane.f32.xlu1 %v1240_v57  ;;  %v1248_v3 = vmul.f32 %v1240_v57, %v1240_v57  ;;  %v3224_v12 = vld [vmem:[#allocation5 + $0xe8] sm:$0xff]   ;;  %2982 = vmatprep.subr.bf16.mxu1 %v3433_v1 }
 0xabf   :  { %1244 = vadd.xlane.f32.xlu0 %v1241_v60  ;;  %v1249_v6 = vmul.f32 %v1241_v60, %v1241_v60 }
 0xac0   :  { %2983 = vmatpush3.bf16.msra.mxu1 %v3224_v12 }
 0xac1   :  { %1250 = vadd.xlane.f32.xlu1 %v1248_v3  ;;  %2984 = vmatprep.subr.bf16.mxu1 %v3433_v1 }
 0xac3   :  { %1252 = vadd.xlane.f32.xlu0 %v1249_v6 }
 0xac4   :  { %2985 = vmatpush3.bf16.msra.mxu1 %v3225_v15 }
 0xac5   :  { %2986 = vmatprep.subr.bf16.mxu1 %v3433_v1 }
 0xac8   :  { %2987 = vmatpush3.bf16.msra.mxu1 %v3226_v19 }
 0xac9   :  { %3016 = vmatprep.subr.bf16.mxu1 %v3433_v1 }
 0xb4a   :  { %v1243_v20 = vpop.xlane.xlu1 %1242 }
 0xb4b   :  { %v1246_v21 = vmul.f32 0.03125, %v1243_v20 }
 0xb4c   :  { %v1245_v17 = vpop.xlane.xlu0 %1244 }
 0xb4d   :  { %v1247_v22 = vmul.f32 0.03125, %v1245_v17  ;;  %v1256_v2 = vmul.f32 %v1246_v21, %v1246_v21  ;;  %v1260_v16 = vsub.f32 %v1240_v57, %v1246_v21 }
 0xb4e   :  { %v1251_v18 = vpop.xlane.xlu1 %1250 }
 0xb4f   :  { %v1254_v23 = vmul.f32 0.03125, %v1251_v18  ;;  %v1257_v25 = vmul.f32 %v1247_v22, %v1247_v22  ;;  %v1261_v35 = vsub.f32 %v1241_v60, %v1247_v22 }
 0xb50   :  { %v1253_v24 = vpop.xlane.xlu0 %1252 }
 0xb51   :  { %v1258_v26 = vsub.f32 %v1254_v23, %v1256_v2  ;;  %v1255_v27 = vmul.f32 0.03125, %v1253_v24 }
 0xb53   :  { %v1262_v28 = vadd.f32 1e-12, %v1258_v26  ;;  %v1259_v29 = vsub.f32 %v1255_v27, %v1257_v25 }
 0xb55   :  { %3305 = vrsqrt.f32 %v1262_v28  ;;  %v1263_v30 = vadd.f32 1e-12, %v1259_v29 }
 0xb57   :  { %3307 = vrsqrt.f32 %v1263_v30 }
 0xb5f   :  { %v3306_v13 = vpop.eup %3305 }
 0xb60   :  { %v1266_v62 = vmul.f32 %v3306_v13, %v1260_v16 }
 0xb61   :  { %v3308_v63 = vpop.eup %3307 }
 0xb62   :  { %v1267_v0 = vmul.f32 %v3308_v63, %v1261_v35  ;;  %v1272_v37 = vmul.f32 %v1271_v33, %v1266_v62 }
 0xb64   :  { %v1273_v39 = vmul.f32 %v1271_v33, %v1267_v0  ;;  %v3790_v40 = vadd.f32 %v1277_v38, %v1272_v37 }
 0xb66   :  { %v3792_v41 = vadd.f32 %v1277_v38, %v1273_v39 }
 0xb68   :  { %v1299_v42 = vpack.c.bf16 %v3792_v41, %v3790_v40 }
 0xb6a   :  { %2989 = vmatmul.mubr.bf16.vlgmr.msra.gmra.mrb[24].mxu1 %v1299_v42 }
 0xb6b   :  { %3018 = vmatprep.mubr.msk.bf16.mxu1 %vm3434_vm0, %v3433_v1 }
 0xc3d   :  { %v1386_v44 = vpop.f32.mrb[24].mxu1 }
 0xc3e   :  { %v2990_v45 = vpop.f32.mrb[25].mxu1  ;;  %v1387_v50 = vadd.f32 %v1386_v44, %v1303_v5 }
 0xc3f   :  { %v1389_v46 = vpop.f32.mrb[26].mxu1 }
 0xc40   :  { %v1390_v51 = vadd.f32 %v1389_v46, %v1303_v5  ;;  %v2991_v52 = vpop.f32.mrb[27].mxu1 }
 0xc42   :  { %v3805_v53 = vpack.c.bf16 %v1390_v51, %v1387_v50 }
 0xc44   :  { %1397 = vrot.lane.b32.xlu0 %v3805_v53, %s3437_s22  ;;  %1395 = vrot.lane.b32.xlu1 %v3805_v53, %s3436_s21 }
 0xc48   :  { %1399 = vrot.lane.b32.xlu1 %v3805_v53, %s3438_s23 }
 0xc4c   :  { %1401 = vrot.lane.b32.xlu1 %v3805_v53, %s3440_s24 }
 0xcb6   :  { %v3815_v49 = vpop.permute.xlu0 %1397  ;;  %v3817_v54 = vpop.permute.xlu1 %1395 }
 0xcb7   :  { %1499 = vrot.lane.b32.xlu1 %v3815_v49, %s3440_s24  ;;  %1450 = vrot.lane.b32.xlu0 %v3817_v54, %s3440_s24 }
 0xcba   :  { %v3823_v57 = vpop.permute.xlu1 %1399 }
 0xcbb   :  { %1548 = vrot.lane.b32.xlu0 %v3823_v57, %s3440_s24 }
 0xcbe   :  { %v1402_v58 = vpop.permute.xlu1 %1401 }
 0xcbf   :  { %v1407_v59 = vsel %vm371_vm4, %v1402_v58, 0 }
 0xcc0   :  { %2993 = vmatpush3.bf16.xpose.msra.mxu0 %v1407_v59 }
 0xcc1   :  { %2998 = vmatprep.subr.bf16.mxu0 %v3433_v1 }
 0xcc7   :  { %2995 = vmatmul.mubr.msk.bf16.vlgmr.msra.gmra.mrb[28].mxu0 %vm371_vm4, %v3805_v53 }
 0xcc8   :  { %3000 = vmatprep.mubr.msk.bf16.mxu0 %vm3434_vm0, %v3433_v1 }
 0xd29   :  { %v1451_v60 = vpop.permute.xlu0 %1450  ;;  %v1500_v6 = vpop.permute.xlu1 %1499 }
 0xd2a   :  { %v1456_v3 = vsel %vm371_vm4, %v1451_v60, 0  ;;  %v1505_v7 = vsel %vm371_vm4, %v1500_v6, 0 }
 0xd2b   :  { %2999 = vmatpush3.bf16.xpose.msra.mxu0 %v1456_v3 }
 0xd2c   :  { %3004 = vmatprep.subr.bf16.mxu0 %v3433_v1 }
 0xd2d   :  { %v1549_v8 = vpop.permute.xlu0 %1548 }
 0xd2e   :  { %v1554_v9 = vsel %vm371_vm4, %v1549_v8, 0 }
 0xd32   :  { %3001 = vmatmul.mubr.msk.bf16.vlgmr.msra.gmra.mrb[32].mxu0 %vm371_vm4, %v3817_v54 }
 0xd33   :  { %3005 = vmatpush3.bf16.xpose.msra.mxu0 %v1505_v7  ;;  %3006 = vmatprep.mubr.msk.bf16.mxu0 %vm3434_vm0, %v3433_v1 }
 0xd34   :  { %3010 = vmatprep.subr.bf16.mxu0 %v3433_v1 }
 0xd3a   :  { %3007 = vmatmul.mubr.msk.bf16.vlgmr.msra.gmra.mrb[36].mxu0 %vm371_vm4, %v3815_v49 }
 0xd3b   :  { %3011 = vmatpush3.bf16.xpose.msra.mxu0 %v1554_v9  ;;  %3012 = vmatprep.mubr.msk.bf16.mxu0 %vm3434_vm0, %v3433_v1 }
 0xd3c   :  { %3022 = vmatprep.subr.bf16.mxu0 %v3433_v1 }
 0xd42   :  { %3013 = vmatmul.mubr.msk.bf16.vlgmr.msra.gmra.mrb[40].mxu0 %vm371_vm4, %v3823_v57 }
 0xd43   :  { %3024 = vmatprep.mubr.msk.bf16.mxu0 %vm3434_vm0, %v3433_v1 }
 0xd9a   :  { %v1443_v10 = vpop.f32.mrb[28].mxu0 }
 0xd9b   :  { %v1597_v11 = vmul.f32 0.35355338, %v1443_v10  ;;  %v2996_v12 = vpop.f32.mrb[29].mxu0 }
 0xd9c   :  { %v1446_v15 = vpop.f32.mrb[30].mxu0 }
 0xd9d   :  { %v1598_v19 = vmul.f32 0.35355338, %v1446_v15  ;;  %v2997_v20 = vpop.f32.mrb[31].mxu0  ;;  %v1605_v21 = vadd.f32 %v1597_v11, %v3651_v32 }
 0xd9f   :  { %v1613_v17 = vsel %vm582_vm11, %v1605_v21, -inf  ;;  %v1606_v22 = vadd.f32 %v1598_v19, %v3653_v36 }
 0xda0   :  { %1614 = vmax.xlane.f32.xlu1 %v1613_v17 }
 0xda1   :  { %v1616_v18 = vsel %vm582_vm11, %v1606_v22, -inf }
 0xda2   :  { %1617 = vmax.xlane.f32.xlu0 %v1616_v18 }
 0xe05   :  { %v1492_v2 = vpop.f32.mrb[32].mxu0 }
 0xe06   :  { %v1599_v23 = vmul.f32 0.35355338, %v1492_v2  ;;  %v3002_v24 = vpop.f32.mrb[33].mxu0 }
 0xe07   :  { %v1495_v25 = vpop.f32.mrb[34].mxu0 }
 0xe08   :  { %v1600_v26 = vmul.f32 0.35355338, %v1495_v25  ;;  %v3003_v27 = vpop.f32.mrb[35].mxu0  ;;  %v1607_v28 = vadd.f32 %v1599_v23, %v3651_v32 }
 0xe0a   :  { %v1619_v29 = vsel %vm582_vm11, %v1607_v28, -inf  ;;  %v1608_v30 = vadd.f32 %v1600_v26, %v3653_v36 }
 0xe0b   :  { %1620 = vmax.xlane.f32.xlu0 %v1619_v29 }
 0xe0c   :  { %v1622_v16 = vsel %vm582_vm11, %v1608_v30, -inf }
 0xe0d   :  { %1623 = vmax.xlane.f32.xlu1 %v1622_v16  ;;  %v1541_v33 = vpop.f32.mrb[36].mxu0 }
 0xe0e   :  { %v1601_v13 = vmul.f32 0.35355338, %v1541_v33  ;;  %v3008_v35 = vpop.f32.mrb[37].mxu0 }
 0xe0f   :  { %v1544_v62 = vpop.f32.mrb[38].mxu0 }
 0xe10   :  { %v1602_v63 = vmul.f32 0.35355338, %v1544_v62  ;;  %v3009_v0 = vpop.f32.mrb[39].mxu0  ;;  %v1609_v37 = vadd.f32 %v1601_v13, %v3651_v32 }
 0xe12   :  { %v1625_v38 = vsel %vm582_vm11, %v1609_v37, -inf  ;;  %v1610_v39 = vadd.f32 %v1602_v63, %v3653_v36 }
 0xe13   :  { %1626 = vmax.xlane.f32.xlu0 %v1625_v38 }
 0xe14   :  { %v1628_v42 = vsel %vm582_vm11, %v1610_v39, -inf }
 0xe15   :  { %1629 = vmax.xlane.f32.xlu1 %v1628_v42  ;;  %v1590_v5 = vpop.f32.mrb[40].mxu0 }
 0xe16   :  { %v1603_v44 = vmul.f32 0.35355338, %v1590_v5  ;;  %v3014_v45 = vpop.f32.mrb[41].mxu0 }
 0xe17   :  { %v1593_v46 = vpop.f32.mrb[42].mxu0 }
 0xe18   :  { %v1604_v50 = vmul.f32 0.35355338, %v1593_v46  ;;  %v3015_v51 = vpop.f32.mrb[43].mxu0  ;;  %v1611_v52 = vadd.f32 %v1603_v44, %v3651_v32 }
 0xe1a   :  { %v1631_v58 = vsel %vm582_vm11, %v1611_v52, -inf  ;;  %v1612_v59 = vadd.f32 %v1604_v50, %v3653_v36 }
 0xe1b   :  { %1632 = vmax.xlane.f32.xlu0 %v1631_v58 }
 0xe1c   :  { %v1634_v60 = vsel %vm582_vm11, %v1612_v59, -inf }
 0xe1d   :  { %1635 = vmax.xlane.f32.xlu1 %v1634_v60 }
 0xe2d   :  { %v1615_v3 = vpop.xlane.xlu1 %1614 }
 0xe2e   :  { %1752 = vrot.lane.b32.xlu1 %v3817_v54, %s3429_s19  ;;  %v1637_v7 = vsub.f32 %v1605_v21, %v1615_v3 }
 0xe2f   :  { %v1618_v6 = vpop.xlane.xlu0 %1617 }
 0xe30   :  { %v1638_v8 = vsub.f32 %v1606_v22, %v1618_v6  ;;  %v1645_v9 = vmul.f32 1.442695, %v1637_v7 }
 0xe31   :  { %1705 = vrot.lane.b32.xlu0 %v3805_v53, %s3429_s19 }
 0xe32   :  { %v1647_v32 = vmul.f32 1.442695, %v1638_v8  ;;  %3309 = vpow2.f32 %v1645_v9 }
 0xe34   :  { %3311 = vpow2.f32 %v1647_v32 }
 0xe3c   :  { %v3310_v10 = vpop.eup %3309 }
 0xe3d   :  { %v1661_v11 = vsel %vm582_vm11, %v3310_v10, 0.0 }
 0xe3e   :  { %v3312_v36 = vpop.eup %3311 }
 0xe3f   :  { %v1664_v12 = vsel %vm582_vm11, %v3312_v36, 0.0 }
 0xe50   :  { %1662 = vadd.xlane.f32.xlu0 %v1661_v11 }
 0xe52   :  { %1665 = vadd.xlane.f32.xlu1 %v1664_v12 }
 0xe98   :  { %v1621_v54 = vpop.xlane.xlu0 %1620 }
 0xe99   :  { %v1639_v15 = vsub.f32 %v1607_v28, %v1621_v54 }
 0xe9a   :  { %v1624_v19 = vpop.xlane.xlu1 %1623 }
 0xe9b   :  { %v1649_v53 = vmul.f32 1.442695, %v1639_v15  ;;  %v1640_v20 = vsub.f32 %v1608_v30, %v1624_v19 }
 0xe9d   :  { %3313 = vpow2.f32 %v1649_v53  ;;  %v1651_v21 = vmul.f32 1.442695, %v1640_v20 }
 0xe9f   :  { %3315 = vpow2.f32 %v1651_v21 }
 0xea0   :  { %v1627_v17 = vpop.xlane.xlu0 %1626 }
 0xea1   :  { %v1641_v22 = vsub.f32 %v1609_v37, %v1627_v17 }
 0xea2   :  { %v1630_v18 = vpop.xlane.xlu1 %1629 }
 0xea3   :  { %v1653_v2 = vmul.f32 1.442695, %v1641_v22  ;;  %v1642_v23 = vsub.f32 %v1610_v39, %v1630_v18 }
 0xea5   :  { %3317 = vpow2.f32 %v1653_v2  ;;  %v1655_v24 = vmul.f32 1.442695, %v1642_v23 }
 0xea7   :  { %v3314_v25 = vpop.eup %3313  ;;  %3319 = vpow2.f32 %v1655_v24 }
 0xea8   :  { %v1633_v26 = vpop.xlane.xlu0 %1632  ;;  %v1667_v27 = vsel %vm582_vm11, %v3314_v25, 0.0 }
 0xea9   :  { %v3316_v29 = vpop.eup %3315  ;;  %v1643_v28 = vsub.f32 %v1611_v52, %v1633_v26  ;;  %1668 = vadd.xlane.f32.xlu0 %v1667_v27 }
 0xeaa   :  { %v1636_v16 = vpop.xlane.xlu1 %1635  ;;  %v1670_v30 = vsel %vm582_vm11, %v3316_v29, 0.0 }
 0xeab   :  { %v1657_v33 = vmul.f32 1.442695, %v1643_v28  ;;  %v1644_v13 = vsub.f32 %v1612_v59, %v1636_v16  ;;  %1671 = vadd.xlane.f32.xlu1 %v1670_v30  ;;  %v3227_v30 = vld [vmem:[%s4016_s8 + $0x10] sm:$0xff]  }
 0xeac   :  { %v1706_v35 = vpop.permute.xlu0 %1705 }
 0xead   :  { %3321 = vpow2.f32 %v1657_v33  ;;  %v1659_v62 = vmul.f32 1.442695, %v1644_v13  ;;  %3017 = vmatpush3.bf16.msra.mxu1 %v1706_v35 }
 0xeae   :  { %v1753_v63 = vpop.permute.xlu1 %1752  ;;  %3028 = vmatprep.subr.bf16.mxu1 %v3433_v1 }
 0xeaf   :  { %v3318_v0 = vpop.eup %3317  ;;  %3323 = vpow2.f32 %v1659_v62  ;;  %3023 = vmatpush3.bf16.msra.mxu0 %v1753_v63  ;;  %v3228_v63 = vld [vmem:[%s4016_s8 + $0x18] sm:$0xff]  }
 0xeb0   :  { %v1673_v37 = vsel %vm582_vm11, %v3318_v0, 0.0  ;;  %3034 = vmatprep.subr.bf16.mxu0 %v3433_v1 }
 0xeb1   :  { %v3320_v38 = vpop.eup %3319  ;;  %1674 = vadd.xlane.f32.xlu0 %v1673_v37 }
 0xeb2   :  { %v1676_v39 = vsel %vm582_vm11, %v3320_v38, 0.0 }
 0xeb3   :  { %1677 = vadd.xlane.f32.xlu1 %v1676_v39 }
 0xeb7   :  { %v3322_v42 = vpop.eup %3321 }
 0xeb8   :  { %v1679_v5 = vsel %vm582_vm11, %v3322_v42, 0.0 }
 0xeb9   :  { %v3324_v44 = vpop.eup %3323  ;;  %1680 = vadd.xlane.f32.xlu0 %v1679_v5 }
 0xeba   :  { %v1682_v45 = vsel %vm582_vm11, %v3324_v44, 0.0 }
 0xebb   :  { %1683 = vadd.xlane.f32.xlu1 %v1682_v45 }
 0xecc   :  { %1799 = vrot.lane.b32.xlu1 %v3815_v49, %s3429_s19 }
 0xecf   :  { %1846 = vrot.lane.b32.xlu0 %v3823_v57, %s3429_s19 }
 0xedd   :  { %v1663_v46 = vpop.xlane.xlu0 %1662 }
 0xede   :  { %3325 = vrcp.f32 %v1663_v46 }
 0xedf   :  { %v1666_v50 = vpop.xlane.xlu1 %1665 }
 0xee0   :  { %3327 = vrcp.f32 %v1666_v50 }
 0xee8   :  { %v3326_v51 = vpop.eup %3325 }
 0xee9   :  { %v1693_v58 = vmul.f32 %v3326_v51, %v3310_v10 }
 0xeea   :  { %v3328_v52 = vpop.eup %3327 }
 0xeeb   :  { %v1694_v59 = vmul.f32 %v3328_v52, %v3312_v36 }
 0xeed   :  { %v1701_v60 = vpack.c.bf16 %v1694_v59, %v1693_v58 }
 0xeef   :  { %3019 = vmatmul.mubr.msk.bf16.vlgmr.msra.gmra.mrb[28].mxu1 %vm582_vm11, %v1701_v60 }
 0xef0   :  { %3030 = vmatprep.mubr.msk.bf16.mxu1 %vm3434_vm0, %v3433_v1 }
 0xf36   :  { %v1669_v3 = vpop.xlane.xlu0 %1668 }
 0xf37   :  { %3329 = vrcp.f32 %v1669_v3 }
 0xf38   :  { %v1672_v49 = vpop.xlane.xlu1 %1671 }
 0xf39   :  { %3331 = vrcp.f32 %v1672_v49 }
 0xf3e   :  { %v1675_v6 = vpop.xlane.xlu0 %1674 }
 0xf3f   :  { %3333 = vrcp.f32 %v1675_v6 }
 0xf40   :  { %v1678_v57 = vpop.xlane.xlu1 %1677 }
 0xf41   :  { %v3330_v7 = vpop.eup %3329  ;;  %3335 = vrcp.f32 %v1678_v57 }
 0xf42   :  { %v1695_v9 = vmul.f32 %v3330_v7, %v3314_v25 }
 0xf43   :  { %v3332_v8 = vpop.eup %3331 }
 0xf44   :  { %v1696_v32 = vmul.f32 %v3332_v8, %v3316_v29 }
 0xf46   :  { %v1681_v10 = vpop.xlane.xlu0 %1680  ;;  %v1702_v36 = vpack.c.bf16 %v1696_v32, %v1695_v9 }
 0xf47   :  { %3337 = vrcp.f32 %v1681_v10 }
 0xf48   :  { %3025 = vmatmul.mubr.msk.bf16.vlgmr.msra.gmra.mrb[44].mxu0 %vm582_vm11, %v1702_v36  ;;  %v1684_v11 = vpop.xlane.xlu1 %1683  ;;  %v1932_v36 = vrot.slane %v3801_v43, %v3578_v55  ;;  %v3230_v55 = vld [vmem:[#allocation5 + $0x108] sm:$0xff]  }
 0xf49   :  { %v3334_v12 = vpop.eup %3333  ;;  %3339 = vrcp.f32 %v1684_v11  ;;  %3036 = vmatprep.mubr.msk.bf16.mxu0 %vm3434_vm0, %v3433_v1 }
 0xf4a   :  { %v1847_v54 = vpop.permute.xlu0 %1846  ;;  %v1697_v19 = vmul.f32 %v3334_v12, %v3318_v0 }
 0xf4b   :  { %v3336_v15 = vpop.eup %3335  ;;  %3035 = vmatpush3.bf16.msra.mxu0 %v1847_v54 }
 0xf4c   :  { %v1698_v53 = vmul.f32 %v3336_v15, %v3320_v38  ;;  %v1800_v20 = vpop.permute.xlu1 %1799  ;;  %3048 = vmatprep.subr.bf16.mxu0 %v3433_v1 }
 0xf4d   :  { %3029 = vmatpush3.bf16.msra.mxu1 %v1800_v20 }
 0xf4e   :  { %v1703_v21 = vpack.c.bf16 %v1698_v53, %v1697_v19  ;;  %3040 = vmatprep.subr.bf16.mxu1 %v3433_v1 }
 0xf50   :  { %3031 = vmatmul.mubr.msk.bf16.vlgmr.msra.gmra.mrb[32].mxu1 %vm582_vm11, %v1703_v21 }
 0xf51   :  { %v3338_v17 = vpop.eup %3337  ;;  %3044 = vmatprep.mubr.msk.bf16.mxu1 %vm3434_vm0, %v3433_v1  ;;  %3041 = vmatpush3.bf16.msra.mxu1 %v3227_v30 }
 0xf52   :  { %v1699_v18 = vmul.f32 %v3338_v17, %v3322_v42  ;;  %3042 = vmatprep.subr.bf16.mxu1 %v3433_v1 }
 0xf53   :  { %v3340_v22 = vpop.eup %3339 }
 0xf54   :  { %v1700_v2 = vmul.f32 %v3340_v22, %v3324_v44 }
 0xf55   :  { %3043 = vmatpush3.bf16.msra.mxu1 %v3228_v63 }
 0xf56   :  { %v1704_v23 = vpack.c.bf16 %v1700_v2, %v1699_v18  ;;  %3068 = vmatprep.subr.bf16.mxu1 %v3433_v1  ;;  %v3229_v18 = vld [vmem:[#allocation5 + $0x100] sm:$0xff]   ;;  %v3231_v2 = vld [vmem:[#allocation5 + $0x110] sm:$0xff]  }
 0xf58   :  { %3037 = vmatmul.mubr.msk.bf16.vlgmr.msra.gmra.mrb[48].mxu0 %vm582_vm11, %v1704_v23  ;;  %v3234_v23 = vld [vmem:[#allocation5 + $0x128] sm:$0xff]  }
 0xf59   :  { %3064 = vmatprep.mubr.msk.bf16.mxu0 %vm3434_vm0, %v3433_v1  ;;  %3049 = vmatpush3.bf16.msra.mxu0 %v3229_v18 }
 0xf5a   :  { %3050 = vmatprep.subr.bf16.mxu0 %v3433_v1 }
 0xf5d   :  { %3051 = vmatpush3.bf16.msra.mxu0 %v3230_v55 }
 0xf5e   :  { %3052 = vmatprep.subr.bf16.mxu0 %v3433_v1 }
 0xf61   :  { %3053 = vmatpush3.bf16.msra.mxu0 %v3231_v2 }
 0xf62   :  { %3054 = vmatprep.subr.bf16.mxu0 %v3433_v1 }
 0xfc2   :  { %v1745_v24 = vpop.f32.mrb[28].mxu1 }
 0xfc3   :  { %v3020_v25 = vpop.f32.mrb[29].mxu1 }
 0xfc4   :  { %v1748_v26 = vpop.f32.mrb[30].mxu1  ;;  %v3236_v25 = vld [vmem:[#allocation5 + $0x138] sm:$0xff]  }
 0xfc5   :  { %v3021_v27 = vpop.f32.mrb[31].mxu1 }
0x101b   :  { %v1792_v29 = vpop.f32.mrb[44].mxu0 }
0x101c   :  { %v3026_v28 = vpop.f32.mrb[45].mxu0 }
0x101d   :  { %v1795_v16 = vpop.f32.mrb[46].mxu0 }
0x101e   :  { %v3169_v33 = vpack.i.bf16 %v1795_v16, %v1792_v29  ;;  %v3027_v13 = vpop.f32.mrb[47].mxu0 }
0x1020   :  { %3170 = vrot.lane.b32.xlu1 %v3169_v33, %s3442_s30 }
0x1023   :  { %v1839_v35 = vpop.f32.mrb[32].mxu1 }
0x1024   :  { %v3032_v62 = vpop.f32.mrb[33].mxu1 }
0x1025   :  { %v1842_v0 = vpop.f32.mrb[34].mxu1 }
0x1026   :  { %v3174_v37 = vpack.i.bf16 %v1842_v0, %v1839_v35  ;;  %v3033_v38 = vpop.f32.mrb[35].mxu1 }
0x1028   :  { %3175 = vrot.lane.b32.xlu0 %v3174_v37, %s3443_s11 }
0x102b   :  { %v1886_v39 = vpop.f32.mrb[48].mxu0 }
0x102c   :  { %v3038_v42 = vpop.f32.mrb[49].mxu0 }
0x102d   :  { %v1889_v5 = vpop.f32.mrb[50].mxu0 }
0x102e   :  { %v3179_v44 = vpack.i.bf16 %v1889_v5, %v1886_v39  ;;  %v3039_v45 = vpop.f32.mrb[51].mxu0 }
0x1030   :  { %3180 = vrot.lane.b32.xlu1 %v3179_v44, %s3444_s12  ;;  %v2020_v44 = vrot.slane %v3801_v43, %v3736_v56 }
0x1092   :  { %v3171_v46 = vpop.permute.xlu1 %3170 }
0x1093   :  { %v3173_v51 = vunpack.i.h.bf16 %v3171_v46  ;;  %v3172_v52 = vunpack.i.l.bf16 %v3171_v46 }
0x1095   :  { %v1917_v3 = vsel %vm371_vm4, %v1745_v24, %v3172_v52  ;;  %v1918_v49 = vsel %vm371_vm4, %v1748_v26, %v3173_v51  ;;  %v3235_v24 = vld [vmem:[#allocation5 + $0x130] sm:$0xff]   ;;  %v2026_v52 = vrot.slane %v3801_v43, %v3741_v61 }
0x109a   :  { %v3176_v50 = vpop.permute.xlu0 %3175 }
0x109b   :  { %v3178_v58 = vunpack.i.h.bf16 %v3176_v50  ;;  %v3177_v59 = vunpack.i.l.bf16 %v3176_v50 }
0x109d   :  { %v1920_v7 = vsel %vm582_vm11, %v1918_v49, %v3178_v58  ;;  %v1919_v8 = vsel %vm582_vm11, %v1917_v3, %v3177_v59  ;;  %v3237_v49 = vld [vmem:[#allocation5 + $0x140] sm:$0xff]  }
0x10a2   :  { %v3181_v60 = vpop.permute.xlu1 %3180 }
0x10a3   :  { %v3183_v6 = vunpack.i.h.bf16 %v3181_v60  ;;  %v3182_v57 = vunpack.i.l.bf16 %v3181_v60 }
0x10a5   :  { %v1921_v9 = vsel %vm891_vm12, %v1919_v8, %v3182_v57  ;;  %v1922_v32 = vsel %vm891_vm12, %v1920_v7, %v3183_v6  ;;  %v3238_v6 = vld [vmem:[#allocation5 + $0x148] sm:$0xff]   ;;  %v3239_v57 = vld [vmem:[#allocation5 + $0x150] sm:$0xff]   ;;  %v3240_v7 = vld [vmem:[#allocation5 + $0x158] sm:$0xff]  }
0x10a6   :  { %v1928_v10 = vpack.c.bf16 %v1922_v32, %v1921_v9  ;;  %v3241_v8 = vld [vmem:[#allocation5 + $0x160] sm:$0xff]   ;;  %v3242_v9 = vld [vmem:[#allocation5 + $0x168] sm:$0xff]   ;;  %v3243_v32 = vld [vmem:[#allocation5 + $0x170] sm:$0xff]  }
0x10a8   :  { %3045 = vmatmul.mubr.msk.bf16.vlgmr.msra.gmra.mrb[36].mxu1 %vm915_vm13, %v1928_v10  ;;  %v3244_v10 = vld [vmem:[#allocation5 + $0x178] sm:$0xff]  }
0x10a9   :  { %3084 = vmatprep.mubr.msk.bf16.mxu1 %vm3434_vm0, %v3433_v1  ;;  %3069 = vmatpush3.bf16.msra.mxu1 %v3237_v49 }
0x10aa   :  { %3070 = vmatprep.subr.bf16.mxu1 %v3433_v1 }
0x10ad   :  { %3071 = vmatpush3.bf16.msra.mxu1 %v3238_v6 }
0x10ae   :  { %3072 = vmatprep.subr.bf16.mxu1 %v3433_v1 }
0x10b1   :  { %3073 = vmatpush3.bf16.msra.mxu1 %v3239_v57 }
0x10b2   :  { %3074 = vmatprep.subr.bf16.mxu1 %v3433_v1 }
0x10b5   :  { %3075 = vmatpush3.bf16.msra.mxu1 %v3240_v7 }
0x10b6   :  { %3076 = vmatprep.subr.bf16.mxu1 %v3433_v1 }
0x10b9   :  { %3077 = vmatpush3.bf16.msra.mxu1 %v3241_v8 }
0x10ba   :  { %3078 = vmatprep.subr.bf16.mxu1 %v3433_v1 }
0x10bd   :  { %3079 = vmatpush3.bf16.msra.mxu1 %v3242_v9 }
0x10be   :  { %3080 = vmatprep.subr.bf16.mxu1 %v3433_v1 }
0x10c1   :  { %3081 = vmatpush3.bf16.msra.mxu1 %v3243_v32 }
0x10c2   :  { %3082 = vmatprep.subr.bf16.mxu1 %v3433_v1 }
0x10c5   :  { %3083 = vmatpush3.bf16.msra.mxu1 %v3244_v10 }
0x10c6   :  { %3094 = vmatprep.subr.bf16.mxu1 %v3433_v1 }
0x117b   :  { %v1982_v11 = vpop.f32.mrb[36].mxu1 }
0x117c   :  { %v1983_v12 = vadd.f32 %v1982_v11, %v1932_v36  ;;  %v3046_v54 = vpop.f32.mrb[37].mxu1 }
0x117d   :  { %v1985_v15 = vpop.f32.mrb[38].mxu1 }
0x117e   :  { %v1989_v19 = vadd.f32 %v1983_v12, %v3790_v40  ;;  %v1986_v53 = vadd.f32 %v1985_v15, %v1932_v36  ;;  %v3047_v20 = vpop.f32.mrb[39].mxu1  ;;  %v3232_v40 = vld [vmem:[#allocation5 + $0x118] sm:$0xff]   ;;  %v2050_v36 = vrot.slane %v3801_v43, %v3762_v4 }
0x117f   :  { %3055 = vmatpush3.bf16.msra.mxu0 %v3232_v40 }
0x1180   :  { %v1990_v21 = vadd.f32 %v1986_v53, %v3792_v41  ;;  %1991 = vadd.xlane.f32.xlu0 %v1989_v19  ;;  %v1997_v17 = vmul.f32 %v1989_v19, %v1989_v19  ;;  %v3233_v41 = vld [vmem:[#allocation5 + $0x120] sm:$0xff]   ;;  %3056 = vmatprep.subr.bf16.mxu0 %v3433_v1 }
0x1182   :  { %1993 = vadd.xlane.f32.xlu1 %v1990_v21  ;;  %v1998_v22 = vmul.f32 %v1990_v21, %v1990_v21 }
0x1183   :  { %3057 = vmatpush3.bf16.msra.mxu0 %v3233_v41 }
0x1184   :  { %1999 = vadd.xlane.f32.xlu0 %v1997_v17  ;;  %3058 = vmatprep.subr.bf16.mxu0 %v3433_v1 }
0x1187   :  { %3059 = vmatpush3.bf16.msra.mxu0 %v3234_v23 }
0x1188   :  { %2001 = vadd.xlane.f32.xlu0 %v1998_v22  ;;  %3060 = vmatprep.subr.bf16.mxu0 %v3433_v1 }
0x118b   :  { %3061 = vmatpush3.bf16.msra.mxu0 %v3235_v24 }
0x118c   :  { %3062 = vmatprep.subr.bf16.mxu0 %v3433_v1 }
0x118f   :  { %3063 = vmatpush3.bf16.msra.mxu0 %v3236_v25 }
0x1190   :  { %3088 = vmatprep.subr.bf16.mxu0 %v3433_v1 }
0x120d   :  { %v1992_v26 = vpop.xlane.xlu0 %1991 }
0x120e   :  { %v1995_v27 = vmul.f32 0.03125, %v1992_v26 }
0x120f   :  { %v1994_v29 = vpop.xlane.xlu1 %1993 }
0x1210   :  { %v2005_v16 = vmul.f32 %v1995_v27, %v1995_v27  ;;  %v1996_v30 = vmul.f32 0.03125, %v1994_v29  ;;  %v2009_v39 = vsub.f32 %v1989_v19, %v1995_v27 }
0x1211   :  { %v2000_v28 = vpop.xlane.xlu0 %1999 }
0x1212   :  { %v2003_v33 = vmul.f32 0.03125, %v2000_v28  ;;  %v2006_v62 = vmul.f32 %v1996_v30, %v1996_v30  ;;  %v2010_v45 = vsub.f32 %v1990_v21, %v1996_v30 }
0x1214   :  { %v2007_v13 = vsub.f32 %v2003_v33, %v2005_v16 }
0x1215   :  { %v2002_v35 = vpop.xlane.xlu0 %2001 }
0x1216   :  { %v2011_v63 = vadd.f32 1e-12, %v2007_v13  ;;  %v2004_v0 = vmul.f32 0.03125, %v2002_v35  ;;  %v2179_v13 = vrot.slane %v3801_v43, %v1149_v47  ;;  %v3247_v47 = vld [vmem:[#allocation2 + $0x50] sm:$0xff]  }
0x1218   :  { %3341 = vrsqrt.f32 %v2011_v63  ;;  %v2008_v37 = vsub.f32 %v2004_v0, %v2006_v62 }
0x121a   :  { %v2012_v38 = vadd.f32 1e-12, %v2008_v37 }
0x121c   :  { %3343 = vrsqrt.f32 %v2012_v38 }
0x1222   :  { %v3342_v42 = vpop.eup %3341 }
0x1223   :  { %v2015_v5 = vmul.f32 %v3342_v42, %v2009_v39 }
0x1225   :  { %v2021_v51 = vmul.f32 %v2020_v44, %v2015_v5 }
0x1226   :  { %v3344_v46 = vpop.eup %3343 }
0x1227   :  { %v2016_v50 = vmul.f32 %v3344_v46, %v2010_v45  ;;  %v3935_v59 = vadd.f32 %v2026_v52, %v2021_v51  ;;  %v3245_v45 = vld [vmem:[#allocation2 + $0x40] sm:$0xff]   ;;  %v3246_v46 = vld [vmem:[#allocation2 + $0x48] sm:$0xff]  }
0x1228   :  { %v3249_v51 = vld [vmem:[#allocation2 + $0x60] sm:$0xff]  }
0x1229   :  { %v2022_v58 = vmul.f32 %v2020_v44, %v2016_v50  ;;  %v3248_v50 = vld [vmem:[#allocation2 + $0x58] sm:$0xff]  }
0x122b   :  { %v3937_v60 = vadd.f32 %v2026_v52, %v2022_v58  ;;  %v3250_v52 = vld [vmem:[#allocation2 + $0x68] sm:$0xff]   ;;  %v3251_v58 = vld [vmem:[#allocation2 + $0x70] sm:$0xff]  }
0x122d   :  { %v2046_v3 = vpack.c.bf16 %v3937_v60, %v3935_v59 }
0x122f   :  { %3065 = vmatmul.mubr.bf16.vlgmr.msra.gmra.mrb[52].mxu0 %v2046_v3 }
0x1230   :  { %3090 = vmatprep.mubr.msk.bf16.mxu0 %vm3434_vm0, %v3433_v1 }
0x1302   :  { %v2133_v11 = vpop.f32.mrb[52].mxu0 }
0x1303   :  { %v2134_v12 = vadd.f32 %v2133_v11, %v2050_v36  ;;  %v3066_v54 = vpop.f32.mrb[53].mxu0 }
0x1304   :  { %v2136_v15 = vpop.f32.mrb[54].mxu0 }
0x1305   :  { %v2140_v19 = vmul.f32 %v2134_v12, %v2134_v12  ;;  %v2137_v53 = vadd.f32 %v2136_v15, %v2050_v36  ;;  %v3067_v20 = vpop.f32.mrb[55].mxu0  ;;  %v2300_v15 = vrot.slane %v3801_v43, %v1270_v31 }
0x1307   :  { %v2142_v21 = vmul.f32 %v2140_v19, %v2134_v12  ;;  %v2141_v17 = vmul.f32 %v2137_v53, %v2137_v53 }
0x1309   :  { %v2144_v22 = vmul.f32 0.044715, %v2142_v21  ;;  %v2143_v18 = vmul.f32 %v2141_v17, %v2137_v53 }
0x130b   :  { %v2146_v55 = vadd.f32 %v2144_v22, %v2134_v12  ;;  %v2145_v2 = vmul.f32 0.044715, %v2143_v18 }
0x130d   :  { %v2148_v40 = vmul.f32 0.7978846, %v2146_v55  ;;  %v2147_v41 = vadd.f32 %v2145_v2, %v2137_v53  ;;  %v2306_v55 = vrot.slane %v3801_v43, %v1276_v34  ;;  %v3253_v34 = vld [vmem:[#allocation2 + $0x80] sm:$0xff]   ;;  %v3255_v43 = vld [vmem:[#allocation2 + $0x90] sm:$0xff]  }
0x130f   :  { %3345 = vtanh.f32 %v2148_v40  ;;  %v2149_v23 = vmul.f32 0.7978846, %v2147_v41 }
0x1311   :  { %3347 = vtanh.f32 %v2149_v23 }
0x1319   :  { %v3346_v24 = vpop.eup %3345 }
0x131a   :  { %v2152_v25 = vadd.f32 1.0, %v3346_v24 }
0x131b   :  { %v3348_v26 = vpop.eup %3347 }
0x131c   :  { %v2154_v27 = vmul.f32 0.5, %v2152_v25  ;;  %v2153_v29 = vadd.f32 1.0, %v3348_v26  ;;  %v3256_v25 = vld [vmem:[#allocation2 + $0x98] sm:$0xff]  }
0x131e   :  { %v2155_v28 = vmul.f32 0.5, %v2153_v29  ;;  %v2156_v16 = vmul.f32 %v2154_v27, %v2134_v12 }
0x1320   :  { %v2157_v30 = vmul.f32 %v2155_v28, %v2137_v53  ;;  %v2311_v53 = vmul.u32 8, %v3568_v48  ;;  %v3252_v48 = vld [vmem:[#allocation2 + $0x78] sm:$0xff]  }
0x1322   :  { %v2175_v33 = vpack.c.bf16 %v2157_v30, %v2156_v16  ;;  %vm2312_vm14 = vcmp.eq.s32.totalorder %v3551_v14, %v2311_v53  ;;  %v3254_v14 = vld [vmem:[#allocation2 + $0x88] sm:$0xff]   ;;  %v3257_v30 = vld [vmem:[#allocation2 + $0xa0] sm:$0xff]  }
0x1323   :  { %v2697_v40 = vsel %vm2312_vm14, 1.0, %v3433_v1 }
0x1324   :  { %3085 = vmatmul.mubr.bf16.vlgmr.msra.gmra.mrb[40].mxu1 %v2175_v33  ;;  %v2315_v24 = vpack.c.bf16 %v2697_v40, %v2697_v40  ;;  %v3258_v33 = vld [vmem:[#allocation2 + $0xa8] sm:$0xff]  }
0x1325   :  { %3110 = vmatprep.mubr.msk.bf16.mxu1 %vm3434_vm0, %v3433_v1  ;;  %3095 = vmatpush3.bf16.msra.mxu1 %v3245_v45 }
0x1326   :  { %3096 = vmatprep.subr.bf16.mxu1 %v3433_v1 }
0x1329   :  { %3097 = vmatpush3.bf16.msra.mxu1 %v3246_v46 }
0x132a   :  { %3098 = vmatprep.subr.bf16.mxu1 %v3433_v1 }
0x132d   :  { %3099 = vmatpush3.bf16.msra.mxu1 %v3247_v47 }
0x132e   :  { %3100 = vmatprep.subr.bf16.mxu1 %v3433_v1 }
0x1331   :  { %3101 = vmatpush3.bf16.msra.mxu1 %v3248_v50 }
0x1332   :  { %3102 = vmatprep.subr.bf16.mxu1 %v3433_v1 }
0x1335   :  { %3103 = vmatpush3.bf16.msra.mxu1 %v3249_v51 }
0x1336   :  { %3104 = vmatprep.subr.bf16.mxu1 %v3433_v1 }
0x1339   :  { %3105 = vmatpush3.bf16.msra.mxu1 %v3250_v52 }
0x133a   :  { %3106 = vmatprep.subr.bf16.mxu1 %v3433_v1 }
0x133d   :  { %3107 = vmatpush3.bf16.msra.mxu1 %v3251_v58 }
0x133e   :  { %3108 = vmatprep.subr.bf16.mxu1 %v3433_v1 }
0x1341   :  { %3109 = vmatpush3.bf16.msra.mxu1 %v3252_v48 }
0x13f7   :  { %v2262_v35 = vpop.f32.mrb[40].mxu1 }
0x13f8   :  { %v2263_v62 = vadd.f32 %v2262_v35, %v2179_v13  ;;  %v3086_v63 = vpop.f32.mrb[41].mxu1  ;;  %v3260_v35 = vld [vmem:[#allocation2 + $0xb8] sm:$0xff]  }
0x13f9   :  { %v2265_v0 = vpop.f32.mrb[42].mxu1  ;;  %v3355_v63 = vld [vmem:[%s4013_s5] sm:$0xff] }
0x13fa   :  { %v2269_v37 = vadd.f32 %v2263_v62, %v3935_v59  ;;  %v2266_v38 = vadd.f32 %v2265_v0, %v2179_v13  ;;  %v3087_v39 = vpop.f32.mrb[43].mxu1  ;;  %v3259_v13 = vld [vmem:[#allocation2 + $0xb0] sm:$0xff]   ;;  %v2489_v62 = vld [vmem:[%s4010_s2] sm:$0x3]  ;;  %v2381_v0 = vrot.slane %v3355_v63, %v3736_v56  ;;  %v2498_v45 = vrot.slane %v3355_v63, %v3741_v61  ;;  %s3445_s2 = smov [#allocation7]  }
0x13fb   :  { %v2591_v50 = vrot.slane %v3355_v63, %v3762_v4  ;;  %s2600_s5 = sshll.u32 %s3445_s2, 4  ;;  %s2601_s5 = int_to_ptr.vmem [resolvable:$true] %s2600_s5 }
0x13fc   :  { %v2270_v42 = vadd.f32 %v2266_v38, %v3937_v60  ;;  %2271 = vadd.xlane.f32.xlu1 %v2269_v37  ;;  %v2277_v5 = vmul.f32 %v2269_v37, %v2269_v37  ;;  %s3400_s16 = scalar_lea.vmem %s2601_s5, 32  ;;  %p3405_p3 = scmp.lt.s32.totalorder %s2601_s5, %s2601_s5 }
0x13fd   :  { %p3401_p2 = scmp.ne.s32.totalorder %s2601_s5, %s3400_s16  ;;  %p3406_p4 = scmp.lt.s32.totalorder %s3400_s16, %s3400_s16 }
0x13fe   :  { %2273 = vadd.xlane.f32.xlu0 %v2270_v42  ;;  %v2278_v44 = vmul.f32 %v2270_v42, %v2270_v42 }
0x13ff   :  { %p3407_p5 = por %p3406_p4, %p3405_p3 }
0x1400   :  { %2279 = vadd.xlane.f32.xlu1 %v2277_v5 }
0x1401   :  { %p3408_p6 = pnand %p3407_p5, %p3401_p2 }
0x1402   :  { %2281 = vadd.xlane.f32.xlu0 %v2278_v44 }
0x1411   :  { %2492 = vperm.xlu1 %3184, %v2489_v62  }
0x1489   :  { %v2272_v59 = vpop.xlane.xlu1 %2271 }
0x148a   :  { %v2275_v60 = vmul.f32 0.03125, %v2272_v59 }
0x148b   :  { %v2274_v3 = vpop.xlane.xlu0 %2273 }
0x148c   :  { %v2276_v49 = vmul.f32 0.03125, %v2274_v3  ;;  %v2285_v57 = vmul.f32 %v2275_v60, %v2275_v60  ;;  %v2289_v54 = vsub.f32 %v2269_v37, %v2275_v60 }
0x148d   :  { %v2280_v6 = vpop.xlane.xlu1 %2279 }
0x148e   :  { %v2283_v7 = vmul.f32 0.03125, %v2280_v6  ;;  %v2286_v9 = vmul.f32 %v2276_v49, %v2276_v49  ;;  %v2290_v20 = vsub.f32 %v2270_v42, %v2276_v49 }
0x148f   :  { %v2282_v8 = vpop.xlane.xlu0 %2281 }
0x1490   :  { %v2287_v32 = vsub.f32 %v2283_v7, %v2285_v57  ;;  %v2284_v10 = vmul.f32 0.03125, %v2282_v8 }
0x1491   :  { %v2493_v46 = vpop.permute.xlu1 %2492 }
0x1492   :  { %v2291_v36 = vadd.f32 1e-12, %v2287_v32  ;;  %v2288_v11 = vsub.f32 %v2284_v10, %v2286_v9  ;;  %v2499_v47 = vmul.f32 %v2498_v45, %v2493_v46 }
0x1494   :  { %3349 = vrsqrt.f32 %v2291_v36  ;;  %v2292_v12 = vadd.f32 1e-12, %v2288_v11 }
0x1496   :  { %3351 = vrsqrt.f32 %v2292_v12 }
0x149e   :  { %v3350_v19 = vpop.eup %3349 }
0x149f   :  { %v2295_v21 = vmul.f32 %v3350_v19, %v2289_v54 }
0x14a0   :  { %v3352_v17 = vpop.eup %3351 }
0x14a1   :  { %v2296_v22 = vmul.f32 %v3352_v17, %v2290_v20  ;;  %v2301_v18 = vmul.f32 %v2300_v15, %v2295_v21 }
0x14a3   :  { %v2302_v2 = vmul.f32 %v2300_v15, %v2296_v22  ;;  %v2307_v41 = vadd.f32 %v2306_v55, %v2301_v18 }
0x14a5   :  { %v2308_v23 = vadd.f32 %v2306_v55, %v2302_v2 }
0x14a7   :  { %v2316_v31 = vpack.c.bf16 %v2308_v23, %v2307_v41 }
0x14a9   :  { %3089 = vmatpush3.bf16.msra.mxu0 %v2316_v31 }
0x14aa   :  { %3114 = vmatprep.subr.bf16.mxu0 %v3433_v1 }
0x14ac   :  { %3091 = vmatmul.mubr.msk.bf16.vlgmr.msra.gmra.mrb[56].mxu0 %vm582_vm11, %v2315_v24 }
0x14ad   :  { %3130 = vmatprep.mubr.msk.bf16.mxu0 %vm3434_vm0, %v3433_v1  ;;  %3115 = vmatpush3.bf16.msra.mxu0 %v3253_v34 }
0x14ae   :  { %3116 = vmatprep.subr.bf16.mxu0 %v3433_v1 }
0x14b1   :  { %3117 = vmatpush3.bf16.msra.mxu0 %v3254_v14 }
0x14b2   :  { %3118 = vmatprep.subr.bf16.mxu0 %v3433_v1 }
0x14b5   :  { %3119 = vmatpush3.bf16.msra.mxu0 %v3255_v43 }
0x14b6   :  { %3120 = vmatprep.subr.bf16.mxu0 %v3433_v1 }
0x14b9   :  { %3121 = vmatpush3.bf16.msra.mxu0 %v3256_v25 }
0x14ba   :  { %3122 = vmatprep.subr.bf16.mxu0 %v3433_v1 }
0x14bd   :  { %3123 = vmatpush3.bf16.msra.mxu0 %v3257_v30 }
0x14be   :  { %3124 = vmatprep.subr.bf16.mxu0 %v3433_v1 }
0x14c1   :  { %3125 = vmatpush3.bf16.msra.mxu0 %v3258_v33 }
0x14c2   :  { %3126 = vmatprep.subr.bf16.mxu0 %v3433_v1 }
0x14c5   :  { %3127 = vmatpush3.bf16.msra.mxu0 %v3259_v13 }
0x14c6   :  { %3128 = vmatprep.subr.bf16.mxu0 %v3433_v1 }
0x14c9   :  { %3129 = vmatpush3.bf16.msra.mxu0 %v3260_v35 }
0x157f   :  { %v2354_v26 = vpop.f32.mrb[56].mxu0 }
0x1580   :  { %v2377_v27 = vpack.c.bf16 %v2354_v26, %v2354_v26  ;;  %v3092_v29 = vpop.f32.mrb[57].mxu0 }
0x1581   :  { %v2357_v28 = vpop.f32.mrb[58].mxu0 }
0x1582   :  { %v3093_v16 = vpop.f32.mrb[59].mxu0  ;;  %3111 = vmatmul.mubr.bf16.vlgmr.msra.gmra.mrb[44].mxu1 %v2377_v27 }
0x1655   :  { %v2464_v37 = vpop.f32.mrb[44].mxu1 }
0x1656   :  { %v2465_v38 = vadd.f32 %v2464_v37, %v2381_v0  ;;  %v3112_v39 = vpop.f32.mrb[45].mxu1 }
0x1657   :  { %v2467_v42 = vpop.f32.mrb[46].mxu1 }
0x1658   :  { %3353 = vtanh.f32 %v2465_v38  ;;  %v3113_v5 = vpop.f32.mrb[47].mxu1 }
0x1662   :  { %v3354_v1 = vpop.eup %3353 }
0x1663   :  { %v2488_v44 = vpack.c.bf16 %v3354_v1, %v3354_v1 }
0x1665   :  { %3131 = vmatmul.mubr.bf16.vlgmr.msra.gmra.mrb[60].mxu0 %v2488_v44 }
0x1738   :  { %v2582_v51 = vpop.f32.mrb[60].mxu0 }
0x1739   :  { %v2583_v52 = vadd.f32 %v2582_v51, %v2499_v47  ;;  %v3132_v56 = vpop.f32.mrb[61].mxu0 }
0x173a   :  { %v2585_v58 = vpop.f32.mrb[62].mxu0 }
0x173b   :  { %v3133_v59 = vpop.f32.mrb[63].mxu0  ;;  %v2592_v60 = vadd.f32 %v2591_v50, %v2583_v52 }
0x173d   :  { %2593 = vst [vmem:[#allocation7] sm:$0x3] %v2592_v60 }
0x173e   :  { %3411 = shalt.err (!%p3408_p6)
}
0x173f   :  { %s3412_s18 = scalar_lea.hbm %s4017_s9, 32 }
0x1740   :  { %p3413_p7 = scmp.ne.s32.totalorder %s4017_s9, %s3412_s18  ;;  %p3416_p8 = scmp.lt.u32.totalorder %s3412_s18, %s4017_s9 }
0x1742   :  { %p3418_p9 = pnand %p3416_p8, %p3413_p7 }
0x1744   :  { %3421 = shalt.err (!%p3418_p9)
}
0x1745   :  { %2603 = dma.vmem_to_hbm [thread:$0]  %s2601_s5, 32, %s4017_s9, [#allocation4]  }
0x1746   :  { %3426 = dma.done.wait [#allocation4], 32  }
0x1747   :  { %3427 = vsyncadd [#allocation4], 4294967264 }
0x1748   :  { %2607 = vsyncpa [#allocation3], 1 }
0x1749   :  { %2608 = vsyncpa [#allocation6], 1 }
0x174a   :  { %2609 = vsyncpa [#allocation4], 1 }

</bundles_post_ra>
